<compile_context>
chip_gen: v5e
topology: v5e:2x2
jax: 0.10.0
libtpu: 0.0.40
codegen_flags: <defaults>
</compile_context>

<pallas_src>
import math

import jax
import jax.numpy as jnp
from jax.experimental import pallas as pl
from jax.experimental.pallas import tpu as pltpu

FEATURE_DIM = 10

# 8192 rows * 128 padded lanes * 4 B = 4 MiB per f32 VMEM buffer;
# double-buffered in + out ~= 16 MiB -> fits v5e/v6e/v7x with headroom.
_TARGET_TILE_ROWS = 8192
_MIN_TILE_ROWS = 512          # multiple of 8 (sublane) with decent DMA size
_MEGACORE_MIN_STEPS = 8       # >= 4 grid steps per TensorCore on v7x


def _graph_feedback_kernel(x_ref, w_ref, b_ref, o_ref):
    """out tile = x tile @ W_fold + b_fold (row broadcast).

    x_ref : (TILE_N, F) features tile, native dtype (f32 / bf16)
    w_ref : (F, F)      folded weight, same dtype as x (MXU-native)
    b_ref : (1, F)      folded bias row, f32
    o_ref : (TILE_N, F) output tile, features.dtype
    """
    acc = jnp.dot(x_ref[...], w_ref[...], preferred_element_type=jnp.float32)
    o_ref[...] = (acc + b_ref[...]).astype(o_ref.dtype)


def _round_up(x, m):
    return ((x + m - 1) // m) * m


def _choose_tile_n(n):
    """Fixed target tile, capped so large N still yields >= ~8 grid steps."""
    cap = max(_MIN_TILE_ROWS,
              _round_up(pl.cdiv(n, _MEGACORE_MIN_STEPS), _MIN_TILE_ROWS))
    return min(_TARGET_TILE_ROWS, cap)


def graph_feedback_adapter(features, weight, bias, guidance,
                           *, min_rows_for_pallas=8192):
    """JAX wrapper mirroring GraphFeedbackAdapter.forward.

    features : (N, feature_dim) float32 / bfloat16
    weight   : (feature_dim, feature_dim)  -- PyTorch Linear weight (out, in)
    bias     : (feature_dim,)
    guidance : python dict (host-side scalars, as in the PyTorch module)
    """
    # --- host-side dict handling (identical branching to the torch module) ---
    graph_adj = guidance.get("graph_structure_adjustment", {})
    mix = 0.0
    if "structure_enhancement" in graph_adj:
        enhancement = float(graph_adj["structure_enhancement"])
        if enhancement != 1.0:
            mix = min(abs(enhancement - 1.0), 0.3)
    has_focus = "connectivity_focus" in graph_adj
    focus = float(graph_adj["connectivity_focus"]) if has_focus else 1.0

    # --- short-circuits: exactly the branches PyTorch skips ---
    if mix == 0.0:
        if not has_focus:
            return features            # pure identity, zero HBM traffic
        return features * focus        # weak-typed scalar: preserves dtype

    n, f = features.shape
    in_dtype = features.dtype

    # Fold mix/focus into the tiny parameters (host-side (F,F) op):
    #   out = x @ [focus*((1-mix)I + mix*W^T)] + focus*mix*b
    w_fold_f32 = focus * ((1.0 - mix) * jnp.eye(f, dtype=jnp.float32)
                          + mix * weight.astype(jnp.float32).T)
    b_fold_f32 = (focus * mix) * bias.astype(jnp.float32)

    # Small-N: a pallas_call launch + pipeline warmup dominates; let XLA fuse.
    if n < min_rows_for_pallas:
        out = jnp.dot(features.astype(jnp.float32), w_fold_f32) + b_fold_f32
        return out.astype(in_dtype)

    # Keep HBM traffic dtype-native: MXU consumes bf16/f32 operands directly.
    w_fold = w_fold_f32.astype(in_dtype)
    b_row = b_fold_f32.reshape(1, f)           # f32 bias added after f32 acc

    tile_n = _choose_tile_n(n)
    grid = (pl.cdiv(n, tile_n),)               # last partial block padded

    itemsize = jnp.dtype(in_dtype).itemsize
    cost = pl.CostEstimate(
        flops=2 * n * f * f,
        transcendentals=0,
        bytes_accessed=2 * n * f * itemsize + f * f * itemsize + f * 4,
    )

    out = pl.pallas_call(
        _graph_feedback_kernel,
        out_shape=jax.ShapeDtypeStruct((n, f), in_dtype),
        grid_spec=pltpu.PrefetchScalarGridSpec(
            num_scalar_prefetch=0,
            grid=grid,
            in_specs=[
                pl.BlockSpec((tile_n, f), lambda i: (i, 0)),  # features tile
                pl.BlockSpec((f, f), lambda i: (0, 0)),       # folded weight (resident)
                pl.BlockSpec((1, f), lambda i: (0, 0)),       # folded bias row (resident)
            ],
            out_specs=pl.BlockSpec((tile_n, f), lambda i: (i, 0)),
        ),
        compiler_params=pltpu.CompilerParams(
            dimension_semantics=("parallel",),     # shard N over v7x's 2 TCs
            vmem_limit_bytes=32 * 1024 * 1024,     # > v5e's 16 MiB default scoped
        ),
        cost_estimate=cost,
    )(features, w_fold, b_row)

    return out


if __name__ == "__main__":
    key = jax.random.PRNGKey(0)
    k_feat, k_bias, k_w = jax.random.split(key, 3)

    F = FEATURE_DIM
    # N chosen above the small-N threshold so the Pallas path runs, and NOT a
    # multiple of the tile (or of 8) so the cdiv/partial-block path is tested.
    N = 10000
    features = jax.random.normal(k_feat, (N, F), dtype=jnp.float32)

    # Parameters: identity init (square Linear, per the module) plus a small
    # perturbation so the test also catches any weight-transpose mistake.
    weight = jnp.eye(F, dtype=jnp.float32) + 0.05 * jax.random.normal(
        k_w, (F, F), dtype=jnp.float32
    )
    bound = 1.0 / math.sqrt(F)
    bias = jax.random.uniform(
        k_bias, (F,), dtype=jnp.float32, minval=-bound, maxval=bound
    )

    guidance = {
        "graph_structure_adjustment": {
            "structure_enhancement": 1.2,   # -> mix_ratio = 0.2
            "connectivity_focus": 0.9,
        }
    }

    # --- Pallas path (f32) ---
    out = jax.block_until_ready(
        graph_feedback_adapter(features, weight, bias, guidance)
    )
    mix = min(abs(1.2 - 1.0), 0.3)
    enhanced_ref = features @ weight.T + bias
    ref = ((1.0 - mix) * features + mix * enhanced_ref) * 0.9
    assert out.shape == (N, F) and out.dtype == jnp.float32
    assert jnp.allclose(out, ref, atol=1e-5, rtol=1e-5), "mismatch vs reference (f32)"

    # --- Pallas path (bf16): dtype-native traffic, output in bf16 ---
    features_bf16 = features.astype(jnp.bfloat16)
    out_bf16 = jax.block_until_ready(
        graph_feedback_adapter(features_bf16, weight, bias, guidance)
    )
    assert out_bf16.dtype == jnp.bfloat16
    fb32 = features_bf16.astype(jnp.float32)
    ref_bf = ((1.0 - mix) * fb32 + mix * (fb32 @ weight.T + bias)) * 0.9
    assert jnp.allclose(out_bf16.astype(jnp.float32), ref_bf, atol=5e-2, rtol=5e-2)

    # --- small-N fallback (plain jnp, same folded math) ---
    small = features[:384]
    out_small = jax.block_until_ready(
        graph_feedback_adapter(small, weight, bias, guidance)
    )
    ref_small = ((1.0 - mix) * small + mix * (small @ weight.T + bias)) * 0.9
    assert jnp.allclose(out_small, ref_small, atol=1e-5, rtol=1e-5)

    # --- short-circuit paths (branches PyTorch skips -> no matmul pass) ---
    out_scale_only = jax.block_until_ready(
        graph_feedback_adapter(
            small, weight, bias,
            {"graph_structure_adjustment": {"connectivity_focus": 0.5}},
        )
    )
    assert out_scale_only.dtype == small.dtype
    assert jnp.allclose(out_scale_only, small * 0.5, atol=1e-6)

    scale_bf16 = graph_feedback_adapter(
        small.astype(jnp.bfloat16), weight, bias,
        {"graph_structure_adjustment": {"connectivity_focus": 0.5}},
    )
    assert scale_bf16.dtype == jnp.bfloat16, "scale-only path must preserve dtype"

    out_noop = graph_feedback_adapter(small, weight, bias, {})
    assert jnp.allclose(out_noop, small), "identity path mismatch"

    print("KERNEL_OK")
</pallas_src>

<mosaic_0001>
module attributes {stable_mosaic.version = 11 : i64} {
  func.func @_graph_feedback_kernel(%arg0: i32, %arg1: memref<1536x10xf32, #tpu.memory_space<vmem>>, %arg2: memref<10x10xf32, #tpu.memory_space<vmem>>, %arg3: memref<1x10xf32, #tpu.memory_space<vmem>>, %arg4: memref<1536x10xf32, #tpu.memory_space<vmem>>) attributes {dimension_semantics = [#tpu.dimension_semantics<parallel>], iteration_bounds = array<i64: 7>, scalar_prefetch = 0 : i64, scratch_operands = 0 : i64, tpu.core_type = #tpu.core_type<tc>, window_params = [{transform_indices = @transform_0, window_bounds = array<i64: 1536, 10>}, {pipeline_mode = #tpu.pipeline_mode<synchronous>, transform_indices = @transform_1, window_bounds = array<i64: 10, 10>}, {pipeline_mode = #tpu.pipeline_mode<synchronous>, transform_indices = @transform_2, window_bounds = array<i64: 1, 10>}, {transform_indices = @transform_3, window_bounds = array<i64: 1536, 10>}]} {
    %c0 = arith.constant 0 : index
    %c0_0 = arith.constant 0 : index
    %0 = vector.load %arg1[%c0, %c0_0] : memref<1536x10xf32, #tpu.memory_space<vmem>>, vector<1536x10xf32>
    %c0_1 = arith.constant 0 : index
    %c0_2 = arith.constant 0 : index
    %1 = vector.load %arg2[%c0_1, %c0_2] : memref<10x10xf32, #tpu.memory_space<vmem>>, vector<10x10xf32>
    %cst = arith.constant dense<0.000000e+00> : vector<1536x10xf32>
    %2 = tpu.matmul %0, %1, %cst {dimension_numbers = #tpu.dot_dimension_numbers<[1], [0], [0], [1], [0, 0, 1, 1], [], []>} : vector<1536x10xf32>, vector<10x10xf32>, vector<1536x10xf32> -> vector<1536x10xf32>
    %c0_3 = arith.constant 0 : index
    %c0_4 = arith.constant 0 : index
    %3 = vector.load %arg3[%c0_3, %c0_4] : memref<1x10xf32, #tpu.memory_space<vmem>>, vector<1x10xf32>
    %4 = vector.broadcast %3 : vector<1x10xf32> to vector<1536x10xf32>
    %5 = arith.addf %2, %4 : vector<1536x10xf32>
    %c0_5 = arith.constant 0 : index
    %c0_6 = arith.constant 0 : index
    %6 = vector.load %arg4[%c0_5, %c0_6] : memref<1536x10xf32, #tpu.memory_space<vmem>>, vector<1536x10xf32>
    tpu.vector_store %arg4[%c0_5, %c0_6], %5 {strides = array<i32>} : memref<1536x10xf32, #tpu.memory_space<vmem>>, vector<1536x10xf32>,
    return
  }
  func.func @transform_0(%arg0: i32) -> (i32, i32) {
    %c0_i32 = arith.constant 0 : i32
    %c0_i32_0 = arith.constant 0 : i32
    return %arg0, %c0_i32 : i32, i32
  }
  func.func @transform_1(%arg0: i32) -> (i32, i32) {
    %c0_i32 = arith.constant 0 : i32
    %c0_i32_0 = arith.constant 0 : i32
    %c0_i32_1 = arith.constant 0 : i32
    return %c0_i32, %c0_i32_0 : i32, i32
  }
  func.func @transform_2(%arg0: i32) -> (i32, i32) {
    %c0_i32 = arith.constant 0 : i32
    %c0_i32_0 = arith.constant 0 : i32
    %c0_i32_1 = arith.constant 0 : i32
    return %c0_i32, %c0_i32_0 : i32, i32
  }
  func.func @transform_3(%arg0: i32) -> (i32, i32) {
    %c0_i32 = arith.constant 0 : i32
    %c0_i32_0 = arith.constant 0 : i32
    return %arg0, %c0_i32 : i32, i32
  }
}

</mosaic_0001>

<bundles_post_ra>
// kernel: tpu_custom_call.1
= control target key start
LH: loop header
LB: loop body
LE: loop exit
PB: predicated region body
PF: predicated region fallthrough
CT: control target
= control target key end

     0   :  { %s2517_s12 = smov 0   ;;  %s2519_s13 = smov 0   ;;  %s3677_s0 = inlined_call_operand.vmem [shape: f32[10000,10], index: 0, kind: input, shape index: {}]   ;;  %s3678_s1 = inlined_call_operand.vmem [shape: f32[10,10], index: 1, kind: input, shape index: {}]   ;;  %s3679_s2 = inlined_call_operand.vmem [shape: f32[1,10], index: 2, kind: input, shape index: {}]   ;;  %s3680_s3 = inlined_call_operand.vmem [shape: f32[10000,10], index: 3, kind: output, shape index: {}]  }
   0x1   :  { %s2521_s14 = smov 0  }
   0x2 LB: > { %s2530_s15 = sadd.s32 4294967295, %s2463_s14   ;;  %s2532_s16 = sadd.s32 1, %s2463_s14   ;;  %s2463_s14 = sphi %s2521_s14, %s3689_s14   ;;  %s2459_s13 = sphi %s2519_s13, %s3688_s13   ;;  %s2455_s12 = sphi %s2517_s12, %s3687_s12  }
   0x3   : > { %s85_s17 = ssub.s32 %s2463_s14, %s2532_s16  ;;  %s88_s18 = sadd.s32 1, %s2459_s13 }
   0x4   : > { %p86_p0 = scmp.eq.s32.totalorder %s85_s17, 0  ;;  %p98_p1 = scmp.ne.s32.totalorder %s2459_s13, %s2455_s12 }
   0x5   : > { %p99_p2 = scmp.eq.s32.totalorder %s2530_s15, 6  ;;  %p2099_p3 = scmp.ge.s32.totalorder %s2463_s14, 1 }
   0x6   : > { %s2540_s19 = scalar_select %p86_p0, %s2459_s13, %s88_s18  }
   0x7   : > { %p2542_p4 = por %p99_p2, %p98_p1  ;;  %p146_p5 = scmp.lt.s32.totalorder %s2463_s14, 8 }
   0x9   : > { %p147_p6 = pnand %p2099_p3, %p146_p5 }
   0xa   : > { %s2553_s25 = smul.u32 (!%p147_p6), 192, %s2530_s15  ;;  %s170_s4 = sand.u32 (!%p147_p6), 1, %s2455_s12  }
   0xb   : > { %150 = sbr.rel (%p147_p6) target bundleno = 597 (0x255), region = 32 }
   0xc   : > { %p178_p7 = scmp.lt.s32.totalorder (!%p147_p6), %s2553_s25, 1249  ;;  %s2318_s5 = smul.u32 (!%p147_p6), 1536, %s170_s4 }
   0xe   : > { %s2704_s8 = scalar_lea.vmem (!%p147_p6), [#allocation2], %s2318_s5  }
  0x10   : > { %v385_v0 = vld [vmem:[%s3678_s1 + $0x8] sm:$0x3]  ;;  %vm967_vm0 = vcmask 1041408   ;;  %v384_v1 = vld [vmem:[%s3678_s1] sm:$0xff]  ;;  %s179_s26 = scalar_select %p178_p7, %s2553_s25, 1249  ;;  %vm390_vm1 = vcmask 80896  }
  0x11   : > { %2313 = vmatpush.msk.msra.mxu2 %vm967_vm0, %v385_v0  ;;  %2314 = vmatpush.msk.msra.mxu3 %vm967_vm0, %v385_v0  ;;  %s1764_s11 = ssub.s32 (%p2542_p4), 1250, %s2553_s25  ;;  %s2309_s12 = smul.u32 (%p2542_p4), 1536, %s2530_s15 }
  0x12   : > { %2101 = vmatpush.msk.msra.mxu0 %vm967_vm0, %v385_v0  ;;  %2312 = vmatpush.msk.msra.mxu1 %vm967_vm0, %v385_v0  ;;  %s2100_s27 = sshll.u32 %s179_s26, 3  ;;  %p1765_p8 = scmp.lt.s32.totalorder (%p2542_p4), %s1764_s11, 192 }
  0x13   : > { %2316 = vmatpush.msra.mxu2 %v384_v1  ;;  %2317 = vmatpush.msra.mxu3 %v384_v1  ;;  %s2560_s30 = scalar_lea.vmem %s3677_s0, %s2100_s27  ;;  %s3542_s18 = scalar_lea.vmem (%p2542_p4), %s3680_s3, %s2309_s12  }
  0x14   : > { %986 = vmatpush.msra.mxu0 %v384_v1  ;;  %2315 = vmatpush.msra.mxu1 %v384_v1  ;;  %v288_v2 = vld [vmem:[%s2560_s30 + $0x300] sm:$0xff]  ;;  %v289_v6 = vld [vmem:[%s2560_s30 + $0x308] sm:$0xff]  ;;  %v290_v10 = vld [vmem:[%s2560_s30 + $0x310] sm:$0xff] }
  0x15   : > { %v336_v3 = vld [vmem:[%s2560_s30 + $0x480] sm:$0xff]  ;;  %2198 = vmatmul.msk.f32.vlgmr.msra.gmra.mxu2 %vm390_vm1, %v288_v2  ;;  %v337_v7 = vld [vmem:[%s2560_s30 + $0x488] sm:$0xff]  ;;  %v338_v11 = vld [vmem:[%s2560_s30 + $0x490] sm:$0xff] }
  0x16   : > { %v192_v4 = vld [vmem:[%s2560_s30] sm:$0xff]  ;;  %2246 = vmatmul.msk.f32.vlgmr.msra.gmra.mxu3 %vm390_vm1, %v336_v3  ;;  %v193_v8 = vld [vmem:[%s2560_s30 + $0x8] sm:$0xff]  ;;  %v194_v12 = vld [vmem:[%s2560_s30 + $0x10] sm:$0xff] }
  0x17   : > { %v240_v5 = vld [vmem:[%s2560_s30 + $0x180] sm:$0xff]  ;;  %2102 = vmatmul.msk.f32.vlgmr.msra.gmra.mxu0 %vm390_vm1, %v192_v4  ;;  %v241_v9 = vld [vmem:[%s2560_s30 + $0x188] sm:$0xff]  ;;  %v242_v13 = vld [vmem:[%s2560_s30 + $0x190] sm:$0xff] }
  0x18   : > { %2150 = vmatmul.msk.f32.vlgmr.msra.gmra.mxu1 %vm390_vm1, %v240_v5  ;;  %v291_v14 = vld [vmem:[%s2560_s30 + $0x318] sm:$0xff]  ;;  %v292_v18 = vld [vmem:[%s2560_s30 + $0x320] sm:$0xff]  ;;  %v293_v22 = vld [vmem:[%s2560_s30 + $0x328] sm:$0xff] }
  0x19   : > { %v339_v15 = vld [vmem:[%s2560_s30 + $0x498] sm:$0xff]  ;;  %v340_v19 = vld [vmem:[%s2560_s30 + $0x4a0] sm:$0xff]  ;;  %v341_v23 = vld [vmem:[%s2560_s30 + $0x4a8] sm:$0xff] }
  0x1a   : > { %v195_v16 = vld [vmem:[%s2560_s30 + $0x18] sm:$0xff]  ;;  %v196_v20 = vld [vmem:[%s2560_s30 + $0x20] sm:$0xff]  ;;  %v197_v24 = vld [vmem:[%s2560_s30 + $0x28] sm:$0xff] }
  0x1b   : > { %v243_v17 = vld [vmem:[%s2560_s30 + $0x198] sm:$0xff]  ;;  %v244_v21 = vld [vmem:[%s2560_s30 + $0x1a0] sm:$0xff]  ;;  %v245_v25 = vld [vmem:[%s2560_s30 + $0x1a8] sm:$0xff] }
  0x1c   : > { %v294_v26 = vld [vmem:[%s2560_s30 + $0x330] sm:$0xff]  ;;  %v295_v30 = vld [vmem:[%s2560_s30 + $0x338] sm:$0xff]  ;;  %v296_v34 = vld [vmem:[%s2560_s30 + $0x340] sm:$0xff] }
  0x1d   : > { %2199 = vmatmul.msk.f32.gmra.mxu2 %vm390_vm1, %v289_v6  ;;  %v342_v27 = vld [vmem:[%s2560_s30 + $0x4b0] sm:$0xff]  ;;  %v343_v31 = vld [vmem:[%s2560_s30 + $0x4b8] sm:$0xff]  ;;  %v344_v35 = vld [vmem:[%s2560_s30 + $0x4c0] sm:$0xff] }
  0x1e   : > { %2247 = vmatmul.msk.f32.gmra.mxu3 %vm390_vm1, %v337_v7  ;;  %v198_v28 = vld [vmem:[%s2560_s30 + $0x30] sm:$0xff]  ;;  %v199_v32 = vld [vmem:[%s2560_s30 + $0x38] sm:$0xff]  ;;  %v200_v36 = vld [vmem:[%s2560_s30 + $0x40] sm:$0xff] }
  0x1f   : > { %2103 = vmatmul.msk.f32.gmra.mxu0 %vm390_vm1, %v193_v8  ;;  %v246_v29 = vld [vmem:[%s2560_s30 + $0x1b0] sm:$0xff]  ;;  %v247_v33 = vld [vmem:[%s2560_s30 + $0x1b8] sm:$0xff]  ;;  %v248_v37 = vld [vmem:[%s2560_s30 + $0x1c0] sm:$0xff] }
  0x20   : > { %2151 = vmatmul.msk.f32.gmra.mxu1 %vm390_vm1, %v241_v9  ;;  %v297_v38 = vld [vmem:[%s2560_s30 + $0x348] sm:$0xff]  ;;  %v298_v42 = vld [vmem:[%s2560_s30 + $0x350] sm:$0xff]  ;;  %v299_v46 = vld [vmem:[%s2560_s30 + $0x358] sm:$0xff] }
  0x21   : > { %v345_v39 = vld [vmem:[%s2560_s30 + $0x4c8] sm:$0xff]  ;;  %v346_v43 = vld [vmem:[%s2560_s30 + $0x4d0] sm:$0xff]  ;;  %v347_v47 = vld [vmem:[%s2560_s30 + $0x4d8] sm:$0xff] }
  0x22   : > { %v201_v40 = vld [vmem:[%s2560_s30 + $0x48] sm:$0xff]  ;;  %v202_v44 = vld [vmem:[%s2560_s30 + $0x50] sm:$0xff]  ;;  %v203_v48 = vld [vmem:[%s2560_s30 + $0x58] sm:$0xff] }
  0x23   : > { %v249_v41 = vld [vmem:[%s2560_s30 + $0x1c8] sm:$0xff]  ;;  %v250_v45 = vld [vmem:[%s2560_s30 + $0x1d0] sm:$0xff]  ;;  %v251_v49 = vld [vmem:[%s2560_s30 + $0x1d8] sm:$0xff] }
  0x24   : > { %v300_v50 = vld [vmem:[%s2560_s30 + $0x360] sm:$0xff]  ;;  %v301_v54 = vld [vmem:[%s2560_s30 + $0x368] sm:$0xff]  ;;  %v302_v58 = vld [vmem:[%s2560_s30 + $0x370] sm:$0xff] }
  0x25   : > { %2200 = vmatmul.msk.f32.gmra.mxu2 %vm390_vm1, %v290_v10  ;;  %v348_v51 = vld [vmem:[%s2560_s30 + $0x4e0] sm:$0xff]  ;;  %v349_v55 = vld [vmem:[%s2560_s30 + $0x4e8] sm:$0xff]  ;;  %v350_v59 = vld [vmem:[%s2560_s30 + $0x4f0] sm:$0xff] }
  0x26   : > { %2248 = vmatmul.msk.f32.gmra.mxu3 %vm390_vm1, %v338_v11  ;;  %v204_v52 = vld [vmem:[%s2560_s30 + $0x60] sm:$0xff]  ;;  %v205_v56 = vld [vmem:[%s2560_s30 + $0x68] sm:$0xff]  ;;  %v206_v60 = vld [vmem:[%s2560_s30 + $0x70] sm:$0xff] }
  0x27   : > { %2104 = vmatmul.msk.f32.gmra.mxu0 %vm390_vm1, %v194_v12  ;;  %v252_v53 = vld [vmem:[%s2560_s30 + $0x1e0] sm:$0xff]  ;;  %v253_v57 = vld [vmem:[%s2560_s30 + $0x1e8] sm:$0xff]  ;;  %v254_v61 = vld [vmem:[%s2560_s30 + $0x1f0] sm:$0xff] }
  0x28   : > { %2152 = vmatmul.msk.f32.gmra.mxu1 %vm390_vm1, %v242_v13  ;;  %v303_v62 = vld [vmem:[%s2560_s30 + $0x378] sm:$0xff]  ;;  %v2694_v2 = vld [vmem:[%s3679_s2] ss:$0 sm:$0xff] }
  0x29   : > { %v351_v63 = vld [vmem:[%s2560_s30 + $0x4f8] sm:$0xff]  ;;  %v304_v3 = vld [vmem:[%s2560_s30 + $0x380] sm:$0xff] }
  0x2a   : > { %v207_v0 = vld [vmem:[%s2560_s30 + $0x78] sm:$0xff]  ;;  %v352_v4 = vld [vmem:[%s2560_s30 + $0x500] sm:$0xff] }
  0x2b   : > { %v255_v1 = vld [vmem:[%s2560_s30 + $0x1f8] sm:$0xff]  ;;  %v208_v7 = vld [vmem:[%s2560_s30 + $0x80] sm:$0xff] }
  0x2c   : > { %v256_v8 = vld [vmem:[%s2560_s30 + $0x200] sm:$0xff] }
  0x2d   : > { %2201 = vmatmul.msk.f32.gmra.mxu2 %vm390_vm1, %v291_v14 }
  0x2e   : > { %2249 = vmatmul.msk.f32.gmra.mxu3 %vm390_vm1, %v339_v15  ;;  %v305_v15 = vld [vmem:[%s2560_s30 + $0x388] sm:$0xff] }
  0x2f   : > { %2105 = vmatmul.msk.f32.gmra.mxu0 %vm390_vm1, %v195_v16  ;;  %v353_v16 = vld [vmem:[%s2560_s30 + $0x508] sm:$0xff] }
  0x30   : > { %2153 = vmatmul.msk.f32.gmra.mxu1 %vm390_vm1, %v243_v17 }
  0x35   : > { %2202 = vmatmul.msk.f32.gmra.mxu2 %vm390_vm1, %v292_v18 }
  0x36   : > { %2250 = vmatmul.msk.f32.gmra.mxu3 %vm390_vm1, %v340_v19  ;;  %v209_v19 = vld [vmem:[%s2560_s30 + $0x88] sm:$0xff] }
  0x37   : > { %2106 = vmatmul.msk.f32.gmra.mxu0 %vm390_vm1, %v196_v20  ;;  %v257_v20 = vld [vmem:[%s2560_s30 + $0x208] sm:$0xff] }
  0x38   : > { %2154 = vmatmul.msk.f32.gmra.mxu1 %vm390_vm1, %v244_v21 }
  0x3d   : > { %2203 = vmatmul.msk.f32.gmra.mxu2 %vm390_vm1, %v293_v22 }
  0x3e   : > { %2251 = vmatmul.msk.f32.gmra.mxu3 %vm390_vm1, %v341_v23 }
  0x3f   : > { %2107 = vmatmul.msk.f32.gmra.mxu0 %vm390_vm1, %v197_v24 }
  0x40   : > { %2155 = vmatmul.msk.f32.gmra.mxu1 %vm390_vm1, %v245_v25 }
  0x45   : > { %2204 = vmatmul.msk.f32.gmra.mxu2 %vm390_vm1, %v294_v26 }
  0x46   : > { %2252 = vmatmul.msk.f32.gmra.mxu3 %vm390_vm1, %v342_v27  ;;  %v306_v27 = vld [vmem:[%s2560_s30 + $0x390] sm:$0xff] }
  0x47   : > { %2108 = vmatmul.msk.f32.gmra.mxu0 %vm390_vm1, %v198_v28  ;;  %v354_v28 = vld [vmem:[%s2560_s30 + $0x510] sm:$0xff] }
  0x48   : > { %2156 = vmatmul.msk.f32.gmra.mxu1 %vm390_vm1, %v246_v29 }
  0x4d   : > { %2205 = vmatmul.msk.f32.gmra.mxu2 %vm390_vm1, %v295_v30 }
  0x4e   : > { %2253 = vmatmul.msk.f32.gmra.mxu3 %vm390_vm1, %v343_v31  ;;  %v210_v31 = vld [vmem:[%s2560_s30 + $0x90] sm:$0xff] }
  0x4f   : > { %2109 = vmatmul.msk.f32.gmra.mxu0 %vm390_vm1, %v199_v32  ;;  %v258_v32 = vld [vmem:[%s2560_s30 + $0x210] sm:$0xff] }
  0x50   : > { %2157 = vmatmul.msk.f32.gmra.mxu1 %vm390_vm1, %v247_v33 }
  0x55   : > { %2206 = vmatmul.msk.f32.gmra.mxu2 %vm390_vm1, %v296_v34 }
  0x56   : > { %2254 = vmatmul.msk.f32.gmra.mxu3 %vm390_vm1, %v344_v35 }
  0x57   : > { %2110 = vmatmul.msk.f32.gmra.mxu0 %vm390_vm1, %v200_v36 }
  0x58   : > { %2158 = vmatmul.msk.f32.gmra.mxu1 %vm390_vm1, %v248_v37 }
  0x5d   : > { %2207 = vmatmul.msk.f32.gmra.mxu2 %vm390_vm1, %v297_v38 }
  0x5e   : > { %2255 = vmatmul.msk.f32.gmra.mxu3 %vm390_vm1, %v345_v39  ;;  %v307_v39 = vld [vmem:[%s2560_s30 + $0x398] sm:$0xff] }
  0x5f   : > { %2111 = vmatmul.msk.f32.gmra.mxu0 %vm390_vm1, %v201_v40  ;;  %v355_v40 = vld [vmem:[%s2560_s30 + $0x518] sm:$0xff] }
  0x60   : > { %2159 = vmatmul.msk.f32.gmra.mxu1 %vm390_vm1, %v249_v41 }
  0x65   : > { %2208 = vmatmul.msk.f32.gmra.mxu2 %vm390_vm1, %v298_v42 }
  0x66   : > { %2256 = vmatmul.msk.f32.gmra.mxu3 %vm390_vm1, %v346_v43  ;;  %v211_v43 = vld [vmem:[%s2560_s30 + $0x98] sm:$0xff] }
  0x67   : > { %2112 = vmatmul.msk.f32.gmra.mxu0 %vm390_vm1, %v202_v44  ;;  %v259_v44 = vld [vmem:[%s2560_s30 + $0x218] sm:$0xff] }
  0x68   : > { %2160 = vmatmul.msk.f32.gmra.mxu1 %vm390_vm1, %v250_v45 }
  0x6d   : > { %2209 = vmatmul.msk.f32.gmra.mxu2 %vm390_vm1, %v299_v46 }
  0x6e   : > { %2257 = vmatmul.msk.f32.gmra.mxu3 %vm390_vm1, %v347_v47 }
  0x6f   : > { %2113 = vmatmul.msk.f32.gmra.mxu0 %vm390_vm1, %v203_v48 }
  0x70   : > { %2161 = vmatmul.msk.f32.gmra.mxu1 %vm390_vm1, %v251_v49 }
  0x75   : > { %2210 = vmatmul.msk.f32.gmra.mxu2 %vm390_vm1, %v300_v50 }
  0x76   : > { %2258 = vmatmul.msk.f32.gmra.mxu3 %vm390_vm1, %v348_v51  ;;  %v308_v51 = vld [vmem:[%s2560_s30 + $0x3a0] sm:$0xff] }
  0x77   : > { %2114 = vmatmul.msk.f32.gmra.mxu0 %vm390_vm1, %v204_v52  ;;  %v356_v52 = vld [vmem:[%s2560_s30 + $0x520] sm:$0xff] }
  0x78   : > { %2162 = vmatmul.msk.f32.gmra.mxu1 %vm390_vm1, %v252_v53 }
  0x7d   : > { %2211 = vmatmul.msk.f32.gmra.mxu2 %vm390_vm1, %v301_v54 }
  0x7e   : > { %2259 = vmatmul.msk.f32.gmra.mxu3 %vm390_vm1, %v349_v55  ;;  %v212_v55 = vld [vmem:[%s2560_s30 + $0xa0] sm:$0xff] }
  0x7f   : > { %2115 = vmatmul.msk.f32.gmra.mxu0 %vm390_vm1, %v205_v56  ;;  %v260_v56 = vld [vmem:[%s2560_s30 + $0x220] sm:$0xff] }
  0x80   : > { %2163 = vmatmul.msk.f32.gmra.mxu1 %vm390_vm1, %v253_v57 }
  0x85   : > { %2212 = vmatmul.msk.f32.gmra.mxu2 %vm390_vm1, %v302_v58 }
  0x86   : > { %2260 = vmatmul.msk.f32.gmra.mxu3 %vm390_vm1, %v350_v59 }
  0x87   : > { %2116 = vmatmul.msk.f32.gmra.mxu0 %vm390_vm1, %v206_v60 }
  0x88   : > { %2164 = vmatmul.msk.f32.gmra.mxu1 %vm390_vm1, %v254_v61 }
  0x8d   : > { %2213 = vmatmul.msk.f32.gmra.mxu2 %vm390_vm1, %v303_v62 }
  0x8e   : > { %2261 = vmatmul.msk.f32.gmra.mxu3 %vm390_vm1, %v351_v63  ;;  %v309_v63 = vld [vmem:[%s2560_s30 + $0x3a8] sm:$0xff] }
  0x8f   : > { %2117 = vmatmul.msk.f32.gmra.mxu0 %vm390_vm1, %v207_v0  ;;  %v357_v0 = vld [vmem:[%s2560_s30 + $0x528] sm:$0xff] }
  0x90   : > { %2165 = vmatmul.msk.f32.gmra.mxu1 %vm390_vm1, %v255_v1 }
  0x94   : > { %v988_v5 = vpop.f32.mrf.mxu0 }
  0x95   : > { %v1132_v6 = vpop.f32.mrf.mxu1  ;;  %v989_v9 = vadd.f32 %v2694_v2, %v988_v5  ;;  %2214 = vmatmul.msk.f32.gmra.mxu2 %vm390_vm1, %v304_v3  ;;  %v261_v5 = vld [vmem:[%s2560_s30 + $0x228] sm:$0xff] }
  0x96   : > { %v1133_v10 = vadd.f32 %v2694_v2, %v1132_v6  ;;  %2262 = vmatmul.msk.f32.gmra.mxu3 %vm390_vm1, %v352_v4  ;;  %v213_v4 = vld [vmem:[%s2560_s30 + $0xa8] sm:$0xff] }
  0x97   : > { %1564 = vst.msk [vmem:[%s2704_s8] sm:$0xff] %vm390_vm1, %v989_v9  ;;  %2118 = vmatmul.msk.f32.gmra.mxu0 %vm390_vm1, %v208_v7 }
  0x98   : > { %2166 = vmatmul.msk.f32.gmra.mxu1 %vm390_vm1, %v256_v8  ;;  %1612 = vst.msk [vmem:[%s2704_s8 + $0x180] sm:$0xff] %vm390_vm1, %v1133_v10  ;;  %v1276_v11 = vpop.f32.mrf.mxu2 }
  0x99   : > { %v1420_v12 = vpop.f32.mrf.mxu3  ;;  %v1277_v13 = vadd.f32 %v2694_v2, %v1276_v11 }
  0x9a   : > { %v1421_v14 = vadd.f32 %v2694_v2, %v1420_v12  ;;  %v310_v12 = vld [vmem:[%s2560_s30 + $0x3b0] sm:$0xff] }
  0x9b   : > { %1660 = vst.msk [vmem:[%s2704_s8 + $0x300] sm:$0xff] %vm390_vm1, %v1277_v13  ;;  %v358_v13 = vld [vmem:[%s2560_s30 + $0x530] sm:$0xff] }
  0x9c   : > { %v991_v17 = vpop.f32.mrf.mxu0  ;;  %1708 = vst.msk [vmem:[%s2704_s8 + $0x480] sm:$0xff] %vm390_vm1, %v1421_v14 }
  0x9d   : > { %v1135_v18 = vpop.f32.mrf.mxu1  ;;  %v992_v21 = vadd.f32 %v2694_v2, %v991_v17  ;;  %2215 = vmatmul.msk.f32.gmra.mxu2 %vm390_vm1, %v305_v15  ;;  %v262_v17 = vld [vmem:[%s2560_s30 + $0x230] sm:$0xff] }
  0x9e   : > { %v1136_v22 = vadd.f32 %v2694_v2, %v1135_v18  ;;  %2263 = vmatmul.msk.f32.gmra.mxu3 %vm390_vm1, %v353_v16  ;;  %v214_v16 = vld [vmem:[%s2560_s30 + $0xb0] sm:$0xff] }
  0x9f   : > { %1565 = vst.msk [vmem:[%s2704_s8 + $0x8] sm:$0xff] %vm390_vm1, %v992_v21  ;;  %2119 = vmatmul.msk.f32.gmra.mxu0 %vm390_vm1, %v209_v19 }
  0xa0   : > { %2167 = vmatmul.msk.f32.gmra.mxu1 %vm390_vm1, %v257_v20  ;;  %1613 = vst.msk [vmem:[%s2704_s8 + $0x188] sm:$0xff] %vm390_vm1, %v1136_v22  ;;  %v1279_v23 = vpop.f32.mrf.mxu2 }
  0xa1   : > { %v1423_v24 = vpop.f32.mrf.mxu3  ;;  %v1280_v25 = vadd.f32 %v2694_v2, %v1279_v23 }
  0xa2   : > { %v1424_v26 = vadd.f32 %v2694_v2, %v1423_v24  ;;  %v311_v24 = vld [vmem:[%s2560_s30 + $0x3b8] sm:$0xff] }
  0xa3   : > { %1661 = vst.msk [vmem:[%s2704_s8 + $0x308] sm:$0xff] %vm390_vm1, %v1280_v25  ;;  %v359_v25 = vld [vmem:[%s2560_s30 + $0x538] sm:$0xff] }
  0xa4   : > { %v994_v29 = vpop.f32.mrf.mxu0  ;;  %1709 = vst.msk [vmem:[%s2704_s8 + $0x488] sm:$0xff] %vm390_vm1, %v1424_v26 }
  0xa5   : > { %v1138_v30 = vpop.f32.mrf.mxu1  ;;  %v995_v33 = vadd.f32 %v2694_v2, %v994_v29  ;;  %2216 = vmatmul.msk.f32.gmra.mxu2 %vm390_vm1, %v306_v27  ;;  %v263_v29 = vld [vmem:[%s2560_s30 + $0x238] sm:$0xff] }
  0xa6   : > { %v1139_v34 = vadd.f32 %v2694_v2, %v1138_v30  ;;  %2264 = vmatmul.msk.f32.gmra.mxu3 %vm390_vm1, %v354_v28  ;;  %v215_v28 = vld [vmem:[%s2560_s30 + $0xb8] sm:$0xff] }
  0xa7   : > { %1566 = vst.msk [vmem:[%s2704_s8 + $0x10] sm:$0xff] %vm390_vm1, %v995_v33  ;;  %2120 = vmatmul.msk.f32.gmra.mxu0 %vm390_vm1, %v210_v31 }
  0xa8   : > { %2168 = vmatmul.msk.f32.gmra.mxu1 %vm390_vm1, %v258_v32  ;;  %1614 = vst.msk [vmem:[%s2704_s8 + $0x190] sm:$0xff] %vm390_vm1, %v1139_v34  ;;  %v1282_v35 = vpop.f32.mrf.mxu2 }
  0xa9   : > { %v1426_v36 = vpop.f32.mrf.mxu3  ;;  %v1283_v37 = vadd.f32 %v2694_v2, %v1282_v35 }
  0xaa   : > { %v1427_v38 = vadd.f32 %v2694_v2, %v1426_v36  ;;  %v312_v36 = vld [vmem:[%s2560_s30 + $0x3c0] sm:$0xff] }
  0xab   : > { %1662 = vst.msk [vmem:[%s2704_s8 + $0x310] sm:$0xff] %vm390_vm1, %v1283_v37  ;;  %v360_v37 = vld [vmem:[%s2560_s30 + $0x540] sm:$0xff] }
  0xac   : > { %v997_v41 = vpop.f32.mrf.mxu0  ;;  %1710 = vst.msk [vmem:[%s2704_s8 + $0x490] sm:$0xff] %vm390_vm1, %v1427_v38 }
  0xad   : > { %v1141_v42 = vpop.f32.mrf.mxu1  ;;  %v998_v45 = vadd.f32 %v2694_v2, %v997_v41  ;;  %2217 = vmatmul.msk.f32.gmra.mxu2 %vm390_vm1, %v307_v39  ;;  %v264_v41 = vld [vmem:[%s2560_s30 + $0x240] sm:$0xff] }
  0xae   : > { %v1142_v46 = vadd.f32 %v2694_v2, %v1141_v42  ;;  %2265 = vmatmul.msk.f32.gmra.mxu3 %vm390_vm1, %v355_v40  ;;  %v216_v40 = vld [vmem:[%s2560_s30 + $0xc0] sm:$0xff] }
  0xaf   : > { %1567 = vst.msk [vmem:[%s2704_s8 + $0x18] sm:$0xff] %vm390_vm1, %v998_v45  ;;  %2121 = vmatmul.msk.f32.gmra.mxu0 %vm390_vm1, %v211_v43 }
  0xb0   : > { %2169 = vmatmul.msk.f32.gmra.mxu1 %vm390_vm1, %v259_v44  ;;  %1615 = vst.msk [vmem:[%s2704_s8 + $0x198] sm:$0xff] %vm390_vm1, %v1142_v46  ;;  %v1285_v47 = vpop.f32.mrf.mxu2 }
  0xb1   : > { %v1429_v48 = vpop.f32.mrf.mxu3  ;;  %v1286_v49 = vadd.f32 %v2694_v2, %v1285_v47 }
  0xb2   : > { %v1430_v50 = vadd.f32 %v2694_v2, %v1429_v48  ;;  %v313_v48 = vld [vmem:[%s2560_s30 + $0x3c8] sm:$0xff] }
  0xb3   : > { %1663 = vst.msk [vmem:[%s2704_s8 + $0x318] sm:$0xff] %vm390_vm1, %v1286_v49  ;;  %v361_v49 = vld [vmem:[%s2560_s30 + $0x548] sm:$0xff] }
  0xb4   : > { %v1000_v53 = vpop.f32.mrf.mxu0  ;;  %1711 = vst.msk [vmem:[%s2704_s8 + $0x498] sm:$0xff] %vm390_vm1, %v1430_v50 }
  0xb5   : > { %v1144_v54 = vpop.f32.mrf.mxu1  ;;  %v1001_v57 = vadd.f32 %v2694_v2, %v1000_v53  ;;  %2218 = vmatmul.msk.f32.gmra.mxu2 %vm390_vm1, %v308_v51  ;;  %v265_v53 = vld [vmem:[%s2560_s30 + $0x248] sm:$0xff] }
  0xb6   : > { %v1145_v58 = vadd.f32 %v2694_v2, %v1144_v54  ;;  %2266 = vmatmul.msk.f32.gmra.mxu3 %vm390_vm1, %v356_v52  ;;  %v217_v52 = vld [vmem:[%s2560_s30 + $0xc8] sm:$0xff] }
  0xb7   : > { %1568 = vst.msk [vmem:[%s2704_s8 + $0x20] sm:$0xff] %vm390_vm1, %v1001_v57  ;;  %2122 = vmatmul.msk.f32.gmra.mxu0 %vm390_vm1, %v212_v55 }
  0xb8   : > { %2170 = vmatmul.msk.f32.gmra.mxu1 %vm390_vm1, %v260_v56  ;;  %1616 = vst.msk [vmem:[%s2704_s8 + $0x1a0] sm:$0xff] %vm390_vm1, %v1145_v58  ;;  %v1288_v59 = vpop.f32.mrf.mxu2 }
  0xb9   : > { %v1432_v60 = vpop.f32.mrf.mxu3  ;;  %v1289_v61 = vadd.f32 %v2694_v2, %v1288_v59 }
  0xba   : > { %v1433_v62 = vadd.f32 %v2694_v2, %v1432_v60  ;;  %v314_v60 = vld [vmem:[%s2560_s30 + $0x3d0] sm:$0xff] }
  0xbb   : > { %1664 = vst.msk [vmem:[%s2704_s8 + $0x320] sm:$0xff] %vm390_vm1, %v1289_v61  ;;  %v362_v61 = vld [vmem:[%s2560_s30 + $0x550] sm:$0xff] }
  0xbc   : > { %v1003_v1 = vpop.f32.mrf.mxu0  ;;  %1712 = vst.msk [vmem:[%s2704_s8 + $0x4a0] sm:$0xff] %vm390_vm1, %v1433_v62 }
  0xbd   : > { %v1147_v3 = vpop.f32.mrf.mxu1  ;;  %v1004_v6 = vadd.f32 %v2694_v2, %v1003_v1  ;;  %2219 = vmatmul.msk.f32.gmra.mxu2 %vm390_vm1, %v309_v63  ;;  %v266_v1 = vld [vmem:[%s2560_s30 + $0x250] sm:$0xff] }
  0xbe   : > { %v1148_v7 = vadd.f32 %v2694_v2, %v1147_v3  ;;  %2267 = vmatmul.msk.f32.gmra.mxu3 %vm390_vm1, %v357_v0  ;;  %v218_v0 = vld [vmem:[%s2560_s30 + $0xd0] sm:$0xff] }
  0xbf   : > { %1569 = vst.msk [vmem:[%s2704_s8 + $0x28] sm:$0xff] %vm390_vm1, %v1004_v6  ;;  %2123 = vmatmul.msk.f32.gmra.mxu0 %vm390_vm1, %v213_v4 }
  0xc0   : > { %2171 = vmatmul.msk.f32.gmra.mxu1 %vm390_vm1, %v261_v5  ;;  %1617 = vst.msk [vmem:[%s2704_s8 + $0x1a8] sm:$0xff] %vm390_vm1, %v1148_v7  ;;  %v1291_v8 = vpop.f32.mrf.mxu2 }
  0xc1   : > { %v1435_v9 = vpop.f32.mrf.mxu3  ;;  %v1292_v10 = vadd.f32 %v2694_v2, %v1291_v8 }
  0xc2   : > { %v1436_v11 = vadd.f32 %v2694_v2, %v1435_v9  ;;  %v315_v9 = vld [vmem:[%s2560_s30 + $0x3d8] sm:$0xff] }
  0xc3   : > { %1665 = vst.msk [vmem:[%s2704_s8 + $0x328] sm:$0xff] %vm390_vm1, %v1292_v10  ;;  %v363_v10 = vld [vmem:[%s2560_s30 + $0x558] sm:$0xff] }
  0xc4   : > { %v1006_v14 = vpop.f32.mrf.mxu0  ;;  %1713 = vst.msk [vmem:[%s2704_s8 + $0x4a8] sm:$0xff] %vm390_vm1, %v1436_v11 }
  0xc5   : > { %v1150_v15 = vpop.f32.mrf.mxu1  ;;  %v1007_v18 = vadd.f32 %v2694_v2, %v1006_v14  ;;  %2220 = vmatmul.msk.f32.gmra.mxu2 %vm390_vm1, %v310_v12  ;;  %v267_v14 = vld [vmem:[%s2560_s30 + $0x258] sm:$0xff] }
  0xc6   : > { %v1151_v19 = vadd.f32 %v2694_v2, %v1150_v15  ;;  %2268 = vmatmul.msk.f32.gmra.mxu3 %vm390_vm1, %v358_v13  ;;  %v219_v13 = vld [vmem:[%s2560_s30 + $0xd8] sm:$0xff] }
  0xc7   : > { %1570 = vst.msk [vmem:[%s2704_s8 + $0x30] sm:$0xff] %vm390_vm1, %v1007_v18  ;;  %2124 = vmatmul.msk.f32.gmra.mxu0 %vm390_vm1, %v214_v16 }
  0xc8   : > { %2172 = vmatmul.msk.f32.gmra.mxu1 %vm390_vm1, %v262_v17  ;;  %1618 = vst.msk [vmem:[%s2704_s8 + $0x1b0] sm:$0xff] %vm390_vm1, %v1151_v19  ;;  %v1294_v20 = vpop.f32.mrf.mxu2 }
  0xc9   : > { %v1438_v21 = vpop.f32.mrf.mxu3  ;;  %v1295_v22 = vadd.f32 %v2694_v2, %v1294_v20 }
  0xca   : > { %v1439_v23 = vadd.f32 %v2694_v2, %v1438_v21  ;;  %v316_v21 = vld [vmem:[%s2560_s30 + $0x3e0] sm:$0xff] }
  0xcb   : > { %1666 = vst.msk [vmem:[%s2704_s8 + $0x330] sm:$0xff] %vm390_vm1, %v1295_v22  ;;  %v364_v22 = vld [vmem:[%s2560_s30 + $0x560] sm:$0xff] }
  0xcc   : > { %v1009_v26 = vpop.f32.mrf.mxu0  ;;  %1714 = vst.msk [vmem:[%s2704_s8 + $0x4b0] sm:$0xff] %vm390_vm1, %v1439_v23 }
  0xcd   : > { %v1153_v27 = vpop.f32.mrf.mxu1  ;;  %v1010_v30 = vadd.f32 %v2694_v2, %v1009_v26  ;;  %2221 = vmatmul.msk.f32.gmra.mxu2 %vm390_vm1, %v311_v24  ;;  %v268_v26 = vld [vmem:[%s2560_s30 + $0x260] sm:$0xff] }
  0xce   : > { %v1154_v31 = vadd.f32 %v2694_v2, %v1153_v27  ;;  %2269 = vmatmul.msk.f32.gmra.mxu3 %vm390_vm1, %v359_v25  ;;  %v220_v25 = vld [vmem:[%s2560_s30 + $0xe0] sm:$0xff] }
  0xcf   : > { %1571 = vst.msk [vmem:[%s2704_s8 + $0x38] sm:$0xff] %vm390_vm1, %v1010_v30  ;;  %2125 = vmatmul.msk.f32.gmra.mxu0 %vm390_vm1, %v215_v28 }
  0xd0   : > { %2173 = vmatmul.msk.f32.gmra.mxu1 %vm390_vm1, %v263_v29  ;;  %1619 = vst.msk [vmem:[%s2704_s8 + $0x1b8] sm:$0xff] %vm390_vm1, %v1154_v31  ;;  %v1297_v32 = vpop.f32.mrf.mxu2 }
  0xd1   : > { %v1441_v33 = vpop.f32.mrf.mxu3  ;;  %v1298_v34 = vadd.f32 %v2694_v2, %v1297_v32 }
  0xd2   : > { %v1442_v35 = vadd.f32 %v2694_v2, %v1441_v33  ;;  %v317_v33 = vld [vmem:[%s2560_s30 + $0x3e8] sm:$0xff] }
  0xd3   : > { %1667 = vst.msk [vmem:[%s2704_s8 + $0x338] sm:$0xff] %vm390_vm1, %v1298_v34  ;;  %v365_v34 = vld [vmem:[%s2560_s30 + $0x568] sm:$0xff] }
  0xd4   : > { %v1012_v38 = vpop.f32.mrf.mxu0  ;;  %1715 = vst.msk [vmem:[%s2704_s8 + $0x4b8] sm:$0xff] %vm390_vm1, %v1442_v35 }
  0xd5   : > { %v1156_v39 = vpop.f32.mrf.mxu1  ;;  %v1013_v42 = vadd.f32 %v2694_v2, %v1012_v38  ;;  %2222 = vmatmul.msk.f32.gmra.mxu2 %vm390_vm1, %v312_v36  ;;  %v269_v38 = vld [vmem:[%s2560_s30 + $0x268] sm:$0xff] }
  0xd6   : > { %v1157_v43 = vadd.f32 %v2694_v2, %v1156_v39  ;;  %2270 = vmatmul.msk.f32.gmra.mxu3 %vm390_vm1, %v360_v37  ;;  %v221_v37 = vld [vmem:[%s2560_s30 + $0xe8] sm:$0xff] }
  0xd7   : > { %1572 = vst.msk [vmem:[%s2704_s8 + $0x40] sm:$0xff] %vm390_vm1, %v1013_v42  ;;  %2126 = vmatmul.msk.f32.gmra.mxu0 %vm390_vm1, %v216_v40 }
  0xd8   : > { %2174 = vmatmul.msk.f32.gmra.mxu1 %vm390_vm1, %v264_v41  ;;  %1620 = vst.msk [vmem:[%s2704_s8 + $0x1c0] sm:$0xff] %vm390_vm1, %v1157_v43  ;;  %v1300_v44 = vpop.f32.mrf.mxu2 }
  0xd9   : > { %v1444_v45 = vpop.f32.mrf.mxu3  ;;  %v1301_v46 = vadd.f32 %v2694_v2, %v1300_v44 }
  0xda   : > { %v1445_v47 = vadd.f32 %v2694_v2, %v1444_v45  ;;  %v318_v45 = vld [vmem:[%s2560_s30 + $0x3f0] sm:$0xff] }
  0xdb   : > { %1668 = vst.msk [vmem:[%s2704_s8 + $0x340] sm:$0xff] %vm390_vm1, %v1301_v46  ;;  %v366_v46 = vld [vmem:[%s2560_s30 + $0x570] sm:$0xff] }
  0xdc   : > { %v1015_v50 = vpop.f32.mrf.mxu0  ;;  %1716 = vst.msk [vmem:[%s2704_s8 + $0x4c0] sm:$0xff] %vm390_vm1, %v1445_v47 }
  0xdd   : > { %v1159_v51 = vpop.f32.mrf.mxu1  ;;  %v1016_v54 = vadd.f32 %v2694_v2, %v1015_v50  ;;  %2223 = vmatmul.msk.f32.gmra.mxu2 %vm390_vm1, %v313_v48  ;;  %v270_v50 = vld [vmem:[%s2560_s30 + $0x270] sm:$0xff] }
  0xde   : > { %v1160_v55 = vadd.f32 %v2694_v2, %v1159_v51  ;;  %2271 = vmatmul.msk.f32.gmra.mxu3 %vm390_vm1, %v361_v49  ;;  %v222_v49 = vld [vmem:[%s2560_s30 + $0xf0] sm:$0xff] }
  0xdf   : > { %1573 = vst.msk [vmem:[%s2704_s8 + $0x48] sm:$0xff] %vm390_vm1, %v1016_v54  ;;  %2127 = vmatmul.msk.f32.gmra.mxu0 %vm390_vm1, %v217_v52 }
  0xe0   : > { %2175 = vmatmul.msk.f32.gmra.mxu1 %vm390_vm1, %v265_v53  ;;  %1621 = vst.msk [vmem:[%s2704_s8 + $0x1c8] sm:$0xff] %vm390_vm1, %v1160_v55  ;;  %v1303_v56 = vpop.f32.mrf.mxu2 }
  0xe1   : > { %v1447_v57 = vpop.f32.mrf.mxu3  ;;  %v1304_v58 = vadd.f32 %v2694_v2, %v1303_v56 }
  0xe2   : > { %v1448_v59 = vadd.f32 %v2694_v2, %v1447_v57  ;;  %v319_v57 = vld [vmem:[%s2560_s30 + $0x3f8] sm:$0xff] }
  0xe3   : > { %1669 = vst.msk [vmem:[%s2704_s8 + $0x348] sm:$0xff] %vm390_vm1, %v1304_v58  ;;  %v367_v58 = vld [vmem:[%s2560_s30 + $0x578] sm:$0xff] }
  0xe4   : > { %v1018_v62 = vpop.f32.mrf.mxu0  ;;  %1717 = vst.msk [vmem:[%s2704_s8 + $0x4c8] sm:$0xff] %vm390_vm1, %v1448_v59 }
  0xe5   : > { %v1162_v63 = vpop.f32.mrf.mxu1  ;;  %v1019_v3 = vadd.f32 %v2694_v2, %v1018_v62  ;;  %2224 = vmatmul.msk.f32.gmra.mxu2 %vm390_vm1, %v314_v60  ;;  %v271_v62 = vld [vmem:[%s2560_s30 + $0x278] sm:$0xff] }
  0xe6   : > { %v1163_v4 = vadd.f32 %v2694_v2, %v1162_v63  ;;  %2272 = vmatmul.msk.f32.gmra.mxu3 %vm390_vm1, %v362_v61  ;;  %v223_v61 = vld [vmem:[%s2560_s30 + $0xf8] sm:$0xff] }
  0xe7   : > { %1574 = vst.msk [vmem:[%s2704_s8 + $0x50] sm:$0xff] %vm390_vm1, %v1019_v3  ;;  %2128 = vmatmul.msk.f32.gmra.mxu0 %vm390_vm1, %v218_v0 }
  0xe8   : > { %2176 = vmatmul.msk.f32.gmra.mxu1 %vm390_vm1, %v266_v1  ;;  %1622 = vst.msk [vmem:[%s2704_s8 + $0x1d0] sm:$0xff] %vm390_vm1, %v1163_v4  ;;  %v1306_v5 = vpop.f32.mrf.mxu2 }
  0xe9   : > { %v1450_v6 = vpop.f32.mrf.mxu3  ;;  %v1307_v7 = vadd.f32 %v2694_v2, %v1306_v5 }
  0xea   : > { %v1451_v8 = vadd.f32 %v2694_v2, %v1450_v6  ;;  %v320_v6 = vld [vmem:[%s2560_s30 + $0x400] sm:$0xff] }
  0xeb   : > { %1670 = vst.msk [vmem:[%s2704_s8 + $0x350] sm:$0xff] %vm390_vm1, %v1307_v7  ;;  %v368_v7 = vld [vmem:[%s2560_s30 + $0x580] sm:$0xff] }
  0xec   : > { %v1021_v11 = vpop.f32.mrf.mxu0  ;;  %1718 = vst.msk [vmem:[%s2704_s8 + $0x4d0] sm:$0xff] %vm390_vm1, %v1451_v8 }
  0xed   : > { %v1165_v12 = vpop.f32.mrf.mxu1  ;;  %v1022_v15 = vadd.f32 %v2694_v2, %v1021_v11  ;;  %2225 = vmatmul.msk.f32.gmra.mxu2 %vm390_vm1, %v315_v9  ;;  %v272_v11 = vld [vmem:[%s2560_s30 + $0x280] sm:$0xff] }
  0xee   : > { %v1166_v16 = vadd.f32 %v2694_v2, %v1165_v12  ;;  %2273 = vmatmul.msk.f32.gmra.mxu3 %vm390_vm1, %v363_v10  ;;  %v224_v10 = vld [vmem:[%s2560_s30 + $0x100] sm:$0xff] }
  0xef   : > { %1575 = vst.msk [vmem:[%s2704_s8 + $0x58] sm:$0xff] %vm390_vm1, %v1022_v15  ;;  %2129 = vmatmul.msk.f32.gmra.mxu0 %vm390_vm1, %v219_v13 }
  0xf0   : > { %2177 = vmatmul.msk.f32.gmra.mxu1 %vm390_vm1, %v267_v14  ;;  %1623 = vst.msk [vmem:[%s2704_s8 + $0x1d8] sm:$0xff] %vm390_vm1, %v1166_v16  ;;  %v1309_v17 = vpop.f32.mrf.mxu2 }
  0xf1   : > { %v1453_v18 = vpop.f32.mrf.mxu3  ;;  %v1310_v19 = vadd.f32 %v2694_v2, %v1309_v17 }
  0xf2   : > { %v1454_v20 = vadd.f32 %v2694_v2, %v1453_v18  ;;  %v321_v18 = vld [vmem:[%s2560_s30 + $0x408] sm:$0xff] }
  0xf3   : > { %1671 = vst.msk [vmem:[%s2704_s8 + $0x358] sm:$0xff] %vm390_vm1, %v1310_v19  ;;  %v369_v19 = vld [vmem:[%s2560_s30 + $0x588] sm:$0xff] }
  0xf4   : > { %v1024_v23 = vpop.f32.mrf.mxu0  ;;  %1719 = vst.msk [vmem:[%s2704_s8 + $0x4d8] sm:$0xff] %vm390_vm1, %v1454_v20 }
  0xf5   : > { %v1168_v24 = vpop.f32.mrf.mxu1  ;;  %v1025_v27 = vadd.f32 %v2694_v2, %v1024_v23  ;;  %2226 = vmatmul.msk.f32.gmra.mxu2 %vm390_vm1, %v316_v21  ;;  %v273_v23 = vld [vmem:[%s2560_s30 + $0x288] sm:$0xff] }
  0xf6   : > { %v1169_v28 = vadd.f32 %v2694_v2, %v1168_v24  ;;  %2274 = vmatmul.msk.f32.gmra.mxu3 %vm390_vm1, %v364_v22  ;;  %v225_v22 = vld [vmem:[%s2560_s30 + $0x108] sm:$0xff] }
  0xf7   : > { %1576 = vst.msk [vmem:[%s2704_s8 + $0x60] sm:$0xff] %vm390_vm1, %v1025_v27  ;;  %2130 = vmatmul.msk.f32.gmra.mxu0 %vm390_vm1, %v220_v25 }
  0xf8   : > { %2178 = vmatmul.msk.f32.gmra.mxu1 %vm390_vm1, %v268_v26  ;;  %1624 = vst.msk [vmem:[%s2704_s8 + $0x1e0] sm:$0xff] %vm390_vm1, %v1169_v28  ;;  %v1312_v29 = vpop.f32.mrf.mxu2 }
  0xf9   : > { %v1456_v30 = vpop.f32.mrf.mxu3  ;;  %v1313_v31 = vadd.f32 %v2694_v2, %v1312_v29 }
  0xfa   : > { %v1457_v32 = vadd.f32 %v2694_v2, %v1456_v30  ;;  %v322_v30 = vld [vmem:[%s2560_s30 + $0x410] sm:$0xff] }
  0xfb   : > { %1672 = vst.msk [vmem:[%s2704_s8 + $0x360] sm:$0xff] %vm390_vm1, %v1313_v31  ;;  %v370_v31 = vld [vmem:[%s2560_s30 + $0x590] sm:$0xff] }
  0xfc   : > { %v1027_v35 = vpop.f32.mrf.mxu0  ;;  %1720 = vst.msk [vmem:[%s2704_s8 + $0x4e0] sm:$0xff] %vm390_vm1, %v1457_v32 }
  0xfd   : > { %v1171_v36 = vpop.f32.mrf.mxu1  ;;  %v1028_v39 = vadd.f32 %v2694_v2, %v1027_v35  ;;  %2227 = vmatmul.msk.f32.gmra.mxu2 %vm390_vm1, %v317_v33  ;;  %v274_v35 = vld [vmem:[%s2560_s30 + $0x290] sm:$0xff] }
  0xfe   : > { %v1172_v40 = vadd.f32 %v2694_v2, %v1171_v36  ;;  %2275 = vmatmul.msk.f32.gmra.mxu3 %vm390_vm1, %v365_v34  ;;  %v226_v34 = vld [vmem:[%s2560_s30 + $0x110] sm:$0xff] }
  0xff   : > { %1577 = vst.msk [vmem:[%s2704_s8 + $0x68] sm:$0xff] %vm390_vm1, %v1028_v39  ;;  %2131 = vmatmul.msk.f32.gmra.mxu0 %vm390_vm1, %v221_v37 }
 0x100   : > { %2179 = vmatmul.msk.f32.gmra.mxu1 %vm390_vm1, %v269_v38  ;;  %1625 = vst.msk [vmem:[%s2704_s8 + $0x1e8] sm:$0xff] %vm390_vm1, %v1172_v40  ;;  %v1315_v41 = vpop.f32.mrf.mxu2 }
 0x101   : > { %v1459_v42 = vpop.f32.mrf.mxu3  ;;  %v1316_v43 = vadd.f32 %v2694_v2, %v1315_v41 }
 0x102   : > { %v1460_v44 = vadd.f32 %v2694_v2, %v1459_v42  ;;  %v323_v42 = vld [vmem:[%s2560_s30 + $0x418] sm:$0xff] }
 0x103   : > { %1673 = vst.msk [vmem:[%s2704_s8 + $0x368] sm:$0xff] %vm390_vm1, %v1316_v43  ;;  %v371_v43 = vld [vmem:[%s2560_s30 + $0x598] sm:$0xff] }
 0x104   : > { %v1030_v47 = vpop.f32.mrf.mxu0  ;;  %1721 = vst.msk [vmem:[%s2704_s8 + $0x4e8] sm:$0xff] %vm390_vm1, %v1460_v44 }
 0x105   : > { %v1174_v48 = vpop.f32.mrf.mxu1  ;;  %v1031_v51 = vadd.f32 %v2694_v2, %v1030_v47  ;;  %2228 = vmatmul.msk.f32.gmra.mxu2 %vm390_vm1, %v318_v45  ;;  %v275_v47 = vld [vmem:[%s2560_s30 + $0x298] sm:$0xff] }
 0x106   : > { %v1175_v52 = vadd.f32 %v2694_v2, %v1174_v48  ;;  %2276 = vmatmul.msk.f32.gmra.mxu3 %vm390_vm1, %v366_v46  ;;  %v227_v46 = vld [vmem:[%s2560_s30 + $0x118] sm:$0xff] }
 0x107   : > { %1578 = vst.msk [vmem:[%s2704_s8 + $0x70] sm:$0xff] %vm390_vm1, %v1031_v51  ;;  %2132 = vmatmul.msk.f32.gmra.mxu0 %vm390_vm1, %v222_v49 }
 0x108   : > { %2180 = vmatmul.msk.f32.gmra.mxu1 %vm390_vm1, %v270_v50  ;;  %1626 = vst.msk [vmem:[%s2704_s8 + $0x1f0] sm:$0xff] %vm390_vm1, %v1175_v52  ;;  %v1318_v53 = vpop.f32.mrf.mxu2 }
 0x109   : > { %v1462_v54 = vpop.f32.mrf.mxu3  ;;  %v1319_v55 = vadd.f32 %v2694_v2, %v1318_v53 }
 0x10a   : > { %v1463_v56 = vadd.f32 %v2694_v2, %v1462_v54  ;;  %v324_v54 = vld [vmem:[%s2560_s30 + $0x420] sm:$0xff] }
 0x10b   : > { %1674 = vst.msk [vmem:[%s2704_s8 + $0x370] sm:$0xff] %vm390_vm1, %v1319_v55  ;;  %v372_v55 = vld [vmem:[%s2560_s30 + $0x5a0] sm:$0xff] }
 0x10c   : > { %v1033_v59 = vpop.f32.mrf.mxu0  ;;  %1722 = vst.msk [vmem:[%s2704_s8 + $0x4f0] sm:$0xff] %vm390_vm1, %v1463_v56 }
 0x10d   : > { %v1177_v60 = vpop.f32.mrf.mxu1  ;;  %v1034_v63 = vadd.f32 %v2694_v2, %v1033_v59  ;;  %2229 = vmatmul.msk.f32.gmra.mxu2 %vm390_vm1, %v319_v57  ;;  %v276_v59 = vld [vmem:[%s2560_s30 + $0x2a0] sm:$0xff] }
 0x10e   : > { %v1178_v0 = vadd.f32 %v2694_v2, %v1177_v60  ;;  %2277 = vmatmul.msk.f32.gmra.mxu3 %vm390_vm1, %v367_v58  ;;  %v228_v58 = vld [vmem:[%s2560_s30 + $0x120] sm:$0xff] }
 0x10f   : > { %1579 = vst.msk [vmem:[%s2704_s8 + $0x78] sm:$0xff] %vm390_vm1, %v1034_v63  ;;  %2133 = vmatmul.msk.f32.gmra.mxu0 %vm390_vm1, %v223_v61 }
 0x110   : > { %2181 = vmatmul.msk.f32.gmra.mxu1 %vm390_vm1, %v271_v62  ;;  %1627 = vst.msk [vmem:[%s2704_s8 + $0x1f8] sm:$0xff] %vm390_vm1, %v1178_v0  ;;  %v1321_v1 = vpop.f32.mrf.mxu2 }
 0x111   : > { %v1465_v3 = vpop.f32.mrf.mxu3  ;;  %v1322_v4 = vadd.f32 %v2694_v2, %v1321_v1 }
 0x112   : > { %v1466_v5 = vadd.f32 %v2694_v2, %v1465_v3  ;;  %v325_v3 = vld [vmem:[%s2560_s30 + $0x428] sm:$0xff] }
 0x113   : > { %1675 = vst.msk [vmem:[%s2704_s8 + $0x378] sm:$0xff] %vm390_vm1, %v1322_v4  ;;  %v373_v4 = vld [vmem:[%s2560_s30 + $0x5a8] sm:$0xff] }
 0x114   : > { %v1036_v8 = vpop.f32.mrf.mxu0  ;;  %1723 = vst.msk [vmem:[%s2704_s8 + $0x4f8] sm:$0xff] %vm390_vm1, %v1466_v5 }
 0x115   : > { %v1180_v9 = vpop.f32.mrf.mxu1  ;;  %v1037_v12 = vadd.f32 %v2694_v2, %v1036_v8  ;;  %2230 = vmatmul.msk.f32.gmra.mxu2 %vm390_vm1, %v320_v6  ;;  %v277_v8 = vld [vmem:[%s2560_s30 + $0x2a8] sm:$0xff] }
 0x116   : > { %v1181_v13 = vadd.f32 %v2694_v2, %v1180_v9  ;;  %2278 = vmatmul.msk.f32.gmra.mxu3 %vm390_vm1, %v368_v7  ;;  %v229_v7 = vld [vmem:[%s2560_s30 + $0x128] sm:$0xff] }
 0x117   : > { %1580 = vst.msk [vmem:[%s2704_s8 + $0x80] sm:$0xff] %vm390_vm1, %v1037_v12  ;;  %2134 = vmatmul.msk.f32.gmra.mxu0 %vm390_vm1, %v224_v10 }
 0x118   : > { %2182 = vmatmul.msk.f32.gmra.mxu1 %vm390_vm1, %v272_v11  ;;  %1628 = vst.msk [vmem:[%s2704_s8 + $0x200] sm:$0xff] %vm390_vm1, %v1181_v13  ;;  %v1324_v14 = vpop.f32.mrf.mxu2 }
 0x119   : > { %v1468_v15 = vpop.f32.mrf.mxu3  ;;  %v1325_v16 = vadd.f32 %v2694_v2, %v1324_v14 }
 0x11a   : > { %v1469_v17 = vadd.f32 %v2694_v2, %v1468_v15  ;;  %v326_v15 = vld [vmem:[%s2560_s30 + $0x430] sm:$0xff] }
 0x11b   : > { %1676 = vst.msk [vmem:[%s2704_s8 + $0x380] sm:$0xff] %vm390_vm1, %v1325_v16  ;;  %v374_v16 = vld [vmem:[%s2560_s30 + $0x5b0] sm:$0xff] }
 0x11c   : > { %v1039_v20 = vpop.f32.mrf.mxu0  ;;  %1724 = vst.msk [vmem:[%s2704_s8 + $0x500] sm:$0xff] %vm390_vm1, %v1469_v17 }
 0x11d   : > { %v1183_v21 = vpop.f32.mrf.mxu1  ;;  %v1040_v24 = vadd.f32 %v2694_v2, %v1039_v20  ;;  %2231 = vmatmul.msk.f32.gmra.mxu2 %vm390_vm1, %v321_v18  ;;  %v278_v20 = vld [vmem:[%s2560_s30 + $0x2b0] sm:$0xff] }
 0x11e   : > { %v1184_v25 = vadd.f32 %v2694_v2, %v1183_v21  ;;  %2279 = vmatmul.msk.f32.gmra.mxu3 %vm390_vm1, %v369_v19  ;;  %v230_v19 = vld [vmem:[%s2560_s30 + $0x130] sm:$0xff] }
 0x11f   : > { %1581 = vst.msk [vmem:[%s2704_s8 + $0x88] sm:$0xff] %vm390_vm1, %v1040_v24  ;;  %2135 = vmatmul.msk.f32.gmra.mxu0 %vm390_vm1, %v225_v22 }
 0x120   : > { %2183 = vmatmul.msk.f32.gmra.mxu1 %vm390_vm1, %v273_v23  ;;  %1629 = vst.msk [vmem:[%s2704_s8 + $0x208] sm:$0xff] %vm390_vm1, %v1184_v25  ;;  %v1327_v26 = vpop.f32.mrf.mxu2 }
 0x121   : > { %v1471_v27 = vpop.f32.mrf.mxu3  ;;  %v1328_v28 = vadd.f32 %v2694_v2, %v1327_v26 }
 0x122   : > { %v1472_v29 = vadd.f32 %v2694_v2, %v1471_v27  ;;  %v327_v27 = vld [vmem:[%s2560_s30 + $0x438] sm:$0xff] }
 0x123   : > { %1677 = vst.msk [vmem:[%s2704_s8 + $0x388] sm:$0xff] %vm390_vm1, %v1328_v28  ;;  %v375_v28 = vld [vmem:[%s2560_s30 + $0x5b8] sm:$0xff] }
 0x124   : > { %v1042_v32 = vpop.f32.mrf.mxu0  ;;  %1725 = vst.msk [vmem:[%s2704_s8 + $0x508] sm:$0xff] %vm390_vm1, %v1472_v29 }
 0x125   : > { %v1186_v33 = vpop.f32.mrf.mxu1  ;;  %v1043_v36 = vadd.f32 %v2694_v2, %v1042_v32  ;;  %2232 = vmatmul.msk.f32.gmra.mxu2 %vm390_vm1, %v322_v30  ;;  %v279_v32 = vld [vmem:[%s2560_s30 + $0x2b8] sm:$0xff] }
 0x126   : > { %v1187_v37 = vadd.f32 %v2694_v2, %v1186_v33  ;;  %2280 = vmatmul.msk.f32.gmra.mxu3 %vm390_vm1, %v370_v31  ;;  %v231_v31 = vld [vmem:[%s2560_s30 + $0x138] sm:$0xff] }
 0x127   : > { %1582 = vst.msk [vmem:[%s2704_s8 + $0x90] sm:$0xff] %vm390_vm1, %v1043_v36  ;;  %2136 = vmatmul.msk.f32.gmra.mxu0 %vm390_vm1, %v226_v34 }
 0x128   : > { %2184 = vmatmul.msk.f32.gmra.mxu1 %vm390_vm1, %v274_v35  ;;  %1630 = vst.msk [vmem:[%s2704_s8 + $0x210] sm:$0xff] %vm390_vm1, %v1187_v37  ;;  %v1330_v38 = vpop.f32.mrf.mxu2 }
 0x129   : > { %v1474_v39 = vpop.f32.mrf.mxu3  ;;  %v1331_v40 = vadd.f32 %v2694_v2, %v1330_v38 }
 0x12a   : > { %v1475_v41 = vadd.f32 %v2694_v2, %v1474_v39  ;;  %v328_v39 = vld [vmem:[%s2560_s30 + $0x440] sm:$0xff] }
 0x12b   : > { %1678 = vst.msk [vmem:[%s2704_s8 + $0x390] sm:$0xff] %vm390_vm1, %v1331_v40  ;;  %v376_v40 = vld [vmem:[%s2560_s30 + $0x5c0] sm:$0xff] }
 0x12c   : > { %v1045_v44 = vpop.f32.mrf.mxu0  ;;  %1726 = vst.msk [vmem:[%s2704_s8 + $0x510] sm:$0xff] %vm390_vm1, %v1475_v41 }
 0x12d   : > { %v1189_v45 = vpop.f32.mrf.mxu1  ;;  %v1046_v48 = vadd.f32 %v2694_v2, %v1045_v44  ;;  %2233 = vmatmul.msk.f32.gmra.mxu2 %vm390_vm1, %v323_v42  ;;  %v280_v44 = vld [vmem:[%s2560_s30 + $0x2c0] sm:$0xff] }
 0x12e   : > { %v1190_v49 = vadd.f32 %v2694_v2, %v1189_v45  ;;  %2281 = vmatmul.msk.f32.gmra.mxu3 %vm390_vm1, %v371_v43  ;;  %v232_v43 = vld [vmem:[%s2560_s30 + $0x140] sm:$0xff] }
 0x12f   : > { %1583 = vst.msk [vmem:[%s2704_s8 + $0x98] sm:$0xff] %vm390_vm1, %v1046_v48  ;;  %2137 = vmatmul.msk.f32.gmra.mxu0 %vm390_vm1, %v227_v46 }
 0x130   : > { %2185 = vmatmul.msk.f32.gmra.mxu1 %vm390_vm1, %v275_v47  ;;  %1631 = vst.msk [vmem:[%s2704_s8 + $0x218] sm:$0xff] %vm390_vm1, %v1190_v49  ;;  %v1333_v50 = vpop.f32.mrf.mxu2 }
 0x131   : > { %v1477_v51 = vpop.f32.mrf.mxu3  ;;  %v1334_v52 = vadd.f32 %v2694_v2, %v1333_v50 }
 0x132   : > { %v1478_v53 = vadd.f32 %v2694_v2, %v1477_v51  ;;  %v329_v51 = vld [vmem:[%s2560_s30 + $0x448] sm:$0xff] }
 0x133   : > { %1679 = vst.msk [vmem:[%s2704_s8 + $0x398] sm:$0xff] %vm390_vm1, %v1334_v52  ;;  %v377_v52 = vld [vmem:[%s2560_s30 + $0x5c8] sm:$0xff] }
 0x134   : > { %v1048_v56 = vpop.f32.mrf.mxu0  ;;  %1727 = vst.msk [vmem:[%s2704_s8 + $0x518] sm:$0xff] %vm390_vm1, %v1478_v53 }
 0x135   : > { %v1192_v57 = vpop.f32.mrf.mxu1  ;;  %v1049_v60 = vadd.f32 %v2694_v2, %v1048_v56  ;;  %2234 = vmatmul.msk.f32.gmra.mxu2 %vm390_vm1, %v324_v54  ;;  %v281_v56 = vld [vmem:[%s2560_s30 + $0x2c8] sm:$0xff] }
 0x136   : > { %v1193_v61 = vadd.f32 %v2694_v2, %v1192_v57  ;;  %2282 = vmatmul.msk.f32.gmra.mxu3 %vm390_vm1, %v372_v55  ;;  %v233_v55 = vld [vmem:[%s2560_s30 + $0x148] sm:$0xff] }
 0x137   : > { %1584 = vst.msk [vmem:[%s2704_s8 + $0xa0] sm:$0xff] %vm390_vm1, %v1049_v60  ;;  %2138 = vmatmul.msk.f32.gmra.mxu0 %vm390_vm1, %v228_v58 }
 0x138   : > { %2186 = vmatmul.msk.f32.gmra.mxu1 %vm390_vm1, %v276_v59  ;;  %1632 = vst.msk [vmem:[%s2704_s8 + $0x220] sm:$0xff] %vm390_vm1, %v1193_v61  ;;  %v1336_v62 = vpop.f32.mrf.mxu2 }
 0x139   : > { %v1480_v63 = vpop.f32.mrf.mxu3  ;;  %v1337_v0 = vadd.f32 %v2694_v2, %v1336_v62 }
 0x13a   : > { %v1481_v1 = vadd.f32 %v2694_v2, %v1480_v63  ;;  %v330_v63 = vld [vmem:[%s2560_s30 + $0x450] sm:$0xff] }
 0x13b   : > { %1680 = vst.msk [vmem:[%s2704_s8 + $0x3a0] sm:$0xff] %vm390_vm1, %v1337_v0  ;;  %v378_v0 = vld [vmem:[%s2560_s30 + $0x5d0] sm:$0xff] }
 0x13c   : > { %v1051_v5 = vpop.f32.mrf.mxu0  ;;  %1728 = vst.msk [vmem:[%s2704_s8 + $0x520] sm:$0xff] %vm390_vm1, %v1481_v1 }
 0x13d   : > { %v1195_v6 = vpop.f32.mrf.mxu1  ;;  %v1052_v9 = vadd.f32 %v2694_v2, %v1051_v5  ;;  %2235 = vmatmul.msk.f32.gmra.mxu2 %vm390_vm1, %v325_v3  ;;  %v282_v5 = vld [vmem:[%s2560_s30 + $0x2d0] sm:$0xff] }
 0x13e   : > { %v1196_v10 = vadd.f32 %v2694_v2, %v1195_v6  ;;  %2283 = vmatmul.msk.f32.gmra.mxu3 %vm390_vm1, %v373_v4  ;;  %v234_v4 = vld [vmem:[%s2560_s30 + $0x150] sm:$0xff] }
 0x13f   : > { %1585 = vst.msk [vmem:[%s2704_s8 + $0xa8] sm:$0xff] %vm390_vm1, %v1052_v9  ;;  %2139 = vmatmul.msk.f32.gmra.mxu0 %vm390_vm1, %v229_v7 }
 0x140   : > { %2187 = vmatmul.msk.f32.gmra.mxu1 %vm390_vm1, %v277_v8  ;;  %1633 = vst.msk [vmem:[%s2704_s8 + $0x228] sm:$0xff] %vm390_vm1, %v1196_v10  ;;  %v1339_v11 = vpop.f32.mrf.mxu2 }
 0x141   : > { %v1483_v12 = vpop.f32.mrf.mxu3  ;;  %v1340_v13 = vadd.f32 %v2694_v2, %v1339_v11 }
 0x142   : > { %v1484_v14 = vadd.f32 %v2694_v2, %v1483_v12  ;;  %v331_v12 = vld [vmem:[%s2560_s30 + $0x458] sm:$0xff] }
 0x143   : > { %1681 = vst.msk [vmem:[%s2704_s8 + $0x3a8] sm:$0xff] %vm390_vm1, %v1340_v13  ;;  %v379_v13 = vld [vmem:[%s2560_s30 + $0x5d8] sm:$0xff] }
 0x144   : > { %v1054_v17 = vpop.f32.mrf.mxu0  ;;  %1729 = vst.msk [vmem:[%s2704_s8 + $0x528] sm:$0xff] %vm390_vm1, %v1484_v14 }
 0x145   : > { %v1198_v18 = vpop.f32.mrf.mxu1  ;;  %v1055_v21 = vadd.f32 %v2694_v2, %v1054_v17  ;;  %2236 = vmatmul.msk.f32.gmra.mxu2 %vm390_vm1, %v326_v15  ;;  %v283_v17 = vld [vmem:[%s2560_s30 + $0x2d8] sm:$0xff] }
 0x146   : > { %v1199_v22 = vadd.f32 %v2694_v2, %v1198_v18  ;;  %2284 = vmatmul.msk.f32.gmra.mxu3 %vm390_vm1, %v374_v16  ;;  %v235_v16 = vld [vmem:[%s2560_s30 + $0x158] sm:$0xff] }
 0x147   : > { %1586 = vst.msk [vmem:[%s2704_s8 + $0xb0] sm:$0xff] %vm390_vm1, %v1055_v21  ;;  %2140 = vmatmul.msk.f32.gmra.mxu0 %vm390_vm1, %v230_v19 }
 0x148   : > { %2188 = vmatmul.msk.f32.gmra.mxu1 %vm390_vm1, %v278_v20  ;;  %1634 = vst.msk [vmem:[%s2704_s8 + $0x230] sm:$0xff] %vm390_vm1, %v1199_v22  ;;  %v1342_v23 = vpop.f32.mrf.mxu2 }
 0x149   : > { %v1486_v24 = vpop.f32.mrf.mxu3  ;;  %v1343_v25 = vadd.f32 %v2694_v2, %v1342_v23 }
 0x14a   : > { %v1487_v26 = vadd.f32 %v2694_v2, %v1486_v24  ;;  %v332_v24 = vld [vmem:[%s2560_s30 + $0x460] sm:$0xff] }
 0x14b   : > { %1682 = vst.msk [vmem:[%s2704_s8 + $0x3b0] sm:$0xff] %vm390_vm1, %v1343_v25  ;;  %v380_v25 = vld [vmem:[%s2560_s30 + $0x5e0] sm:$0xff] }
 0x14c   : > { %v1057_v29 = vpop.f32.mrf.mxu0  ;;  %1730 = vst.msk [vmem:[%s2704_s8 + $0x530] sm:$0xff] %vm390_vm1, %v1487_v26 }
 0x14d   : > { %v1201_v30 = vpop.f32.mrf.mxu1  ;;  %v1058_v33 = vadd.f32 %v2694_v2, %v1057_v29  ;;  %2237 = vmatmul.msk.f32.gmra.mxu2 %vm390_vm1, %v327_v27  ;;  %v284_v29 = vld [vmem:[%s2560_s30 + $0x2e0] sm:$0xff] }
 0x14e   : > { %v1202_v34 = vadd.f32 %v2694_v2, %v1201_v30  ;;  %2285 = vmatmul.msk.f32.gmra.mxu3 %vm390_vm1, %v375_v28  ;;  %v236_v28 = vld [vmem:[%s2560_s30 + $0x160] sm:$0xff] }
 0x14f   : > { %1587 = vst.msk [vmem:[%s2704_s8 + $0xb8] sm:$0xff] %vm390_vm1, %v1058_v33  ;;  %2141 = vmatmul.msk.f32.gmra.mxu0 %vm390_vm1, %v231_v31 }
 0x150   : > { %2189 = vmatmul.msk.f32.gmra.mxu1 %vm390_vm1, %v279_v32  ;;  %1635 = vst.msk [vmem:[%s2704_s8 + $0x238] sm:$0xff] %vm390_vm1, %v1202_v34  ;;  %v1345_v35 = vpop.f32.mrf.mxu2 }
 0x151   : > { %v1489_v36 = vpop.f32.mrf.mxu3  ;;  %v1346_v37 = vadd.f32 %v2694_v2, %v1345_v35 }
 0x152   : > { %v1490_v38 = vadd.f32 %v2694_v2, %v1489_v36  ;;  %v333_v36 = vld [vmem:[%s2560_s30 + $0x468] sm:$0xff] }
 0x153   : > { %1683 = vst.msk [vmem:[%s2704_s8 + $0x3b8] sm:$0xff] %vm390_vm1, %v1346_v37  ;;  %v381_v37 = vld [vmem:[%s2560_s30 + $0x5e8] sm:$0xff] }
 0x154   : > { %v1060_v41 = vpop.f32.mrf.mxu0  ;;  %1731 = vst.msk [vmem:[%s2704_s8 + $0x538] sm:$0xff] %vm390_vm1, %v1490_v38 }
 0x155   : > { %v1204_v42 = vpop.f32.mrf.mxu1  ;;  %v1061_v45 = vadd.f32 %v2694_v2, %v1060_v41  ;;  %2238 = vmatmul.msk.f32.gmra.mxu2 %vm390_vm1, %v328_v39  ;;  %v285_v41 = vld [vmem:[%s2560_s30 + $0x2e8] sm:$0xff] }
 0x156   : > { %v1205_v46 = vadd.f32 %v2694_v2, %v1204_v42  ;;  %2286 = vmatmul.msk.f32.gmra.mxu3 %vm390_vm1, %v376_v40  ;;  %v237_v40 = vld [vmem:[%s2560_s30 + $0x168] sm:$0xff] }
 0x157   : > { %1588 = vst.msk [vmem:[%s2704_s8 + $0xc0] sm:$0xff] %vm390_vm1, %v1061_v45  ;;  %2142 = vmatmul.msk.f32.gmra.mxu0 %vm390_vm1, %v232_v43 }
 0x158   : > { %2190 = vmatmul.msk.f32.gmra.mxu1 %vm390_vm1, %v280_v44  ;;  %1636 = vst.msk [vmem:[%s2704_s8 + $0x240] sm:$0xff] %vm390_vm1, %v1205_v46  ;;  %v1348_v47 = vpop.f32.mrf.mxu2 }
 0x159   : > { %v1492_v48 = vpop.f32.mrf.mxu3  ;;  %v1349_v49 = vadd.f32 %v2694_v2, %v1348_v47 }
 0x15a   : > { %v1493_v50 = vadd.f32 %v2694_v2, %v1492_v48  ;;  %v334_v48 = vld [vmem:[%s2560_s30 + $0x470] sm:$0xff] }
 0x15b   : > { %1684 = vst.msk [vmem:[%s2704_s8 + $0x3c0] sm:$0xff] %vm390_vm1, %v1349_v49  ;;  %v382_v49 = vld [vmem:[%s2560_s30 + $0x5f0] sm:$0xff] }
 0x15c   : > { %v1063_v53 = vpop.f32.mrf.mxu0  ;;  %1732 = vst.msk [vmem:[%s2704_s8 + $0x540] sm:$0xff] %vm390_vm1, %v1493_v50 }
 0x15d   : > { %v1207_v54 = vpop.f32.mrf.mxu1  ;;  %v1064_v57 = vadd.f32 %v2694_v2, %v1063_v53  ;;  %2239 = vmatmul.msk.f32.gmra.mxu2 %vm390_vm1, %v329_v51  ;;  %v286_v53 = vld [vmem:[%s2560_s30 + $0x2f0] sm:$0xff] }
 0x15e   : > { %v1208_v58 = vadd.f32 %v2694_v2, %v1207_v54  ;;  %2287 = vmatmul.msk.f32.gmra.mxu3 %vm390_vm1, %v377_v52  ;;  %v3215_v2 = vld [vmem:[%s3679_s2] ss:$0 sm:$0xff]  ;;  %v238_v52 = vld [vmem:[%s2560_s30 + $0x170] sm:$0xff] }
 0x15f   : > { %1589 = vst.msk [vmem:[%s2704_s8 + $0xc8] sm:$0xff] %vm390_vm1, %v1064_v57  ;;  %2143 = vmatmul.msk.f32.gmra.mxu0 %vm390_vm1, %v233_v55 }
 0x160   : > { %2191 = vmatmul.msk.f32.gmra.mxu1 %vm390_vm1, %v281_v56  ;;  %1637 = vst.msk [vmem:[%s2704_s8 + $0x248] sm:$0xff] %vm390_vm1, %v1208_v58  ;;  %v1351_v59 = vpop.f32.mrf.mxu2 }
 0x161   : > { %v1495_v60 = vpop.f32.mrf.mxu3  ;;  %v1352_v61 = vadd.f32 %v3215_v2, %v1351_v59 }
 0x162   : > { %v1496_v62 = vadd.f32 %v3215_v2, %v1495_v60  ;;  %v335_v60 = vld [vmem:[%s2560_s30 + $0x478] sm:$0xff] }
 0x163   : > { %1685 = vst.msk [vmem:[%s2704_s8 + $0x3c8] sm:$0xff] %vm390_vm1, %v1352_v61  ;;  %v383_v61 = vld [vmem:[%s2560_s30 + $0x5f8] sm:$0xff] }
 0x164   : > { %v1066_v1 = vpop.f32.mrf.mxu0  ;;  %1733 = vst.msk [vmem:[%s2704_s8 + $0x548] sm:$0xff] %vm390_vm1, %v1496_v62 }
 0x165   : > { %v1210_v3 = vpop.f32.mrf.mxu1  ;;  %v1067_v6 = vadd.f32 %v3215_v2, %v1066_v1  ;;  %2240 = vmatmul.msk.f32.gmra.mxu2 %vm390_vm1, %v330_v63  ;;  %v287_v1 = vld [vmem:[%s2560_s30 + $0x2f8] sm:$0xff] }
 0x166   : > { %v1211_v7 = vadd.f32 %v3215_v2, %v1210_v3  ;;  %2288 = vmatmul.msk.f32.gmra.mxu3 %vm390_vm1, %v378_v0  ;;  %v239_v0 = vld [vmem:[%s2560_s30 + $0x178] sm:$0xff] }
 0x167   : > { %1590 = vst.msk [vmem:[%s2704_s8 + $0xd0] sm:$0xff] %vm390_vm1, %v1067_v6  ;;  %2144 = vmatmul.msk.f32.gmra.mxu0 %vm390_vm1, %v234_v4 }
 0x168   : > { %2192 = vmatmul.msk.f32.gmra.mxu1 %vm390_vm1, %v282_v5  ;;  %1638 = vst.msk [vmem:[%s2704_s8 + $0x250] sm:$0xff] %vm390_vm1, %v1211_v7  ;;  %v1354_v8 = vpop.f32.mrf.mxu2 }
 0x169   : > { %v1498_v9 = vpop.f32.mrf.mxu3  ;;  %v1355_v10 = vadd.f32 %v3215_v2, %v1354_v8 }
 0x16a   : > { %v1499_v11 = vadd.f32 %v3215_v2, %v1498_v9 }
 0x16b   : > { %1686 = vst.msk [vmem:[%s2704_s8 + $0x3d0] sm:$0xff] %vm390_vm1, %v1355_v10 }
 0x16c   : > { %v1069_v14 = vpop.f32.mrf.mxu0  ;;  %1734 = vst.msk [vmem:[%s2704_s8 + $0x550] sm:$0xff] %vm390_vm1, %v1499_v11 }
 0x16d   : > { %v1213_v15 = vpop.f32.mrf.mxu1  ;;  %v1070_v18 = vadd.f32 %v3215_v2, %v1069_v14  ;;  %2241 = vmatmul.msk.f32.gmra.mxu2 %vm390_vm1, %v331_v12 }
 0x16e   : > { %v1214_v19 = vadd.f32 %v3215_v2, %v1213_v15  ;;  %2289 = vmatmul.msk.f32.gmra.mxu3 %vm390_vm1, %v379_v13 }
 0x16f   : > { %1591 = vst.msk [vmem:[%s2704_s8 + $0xd8] sm:$0xff] %vm390_vm1, %v1070_v18  ;;  %2145 = vmatmul.msk.f32.gmra.mxu0 %vm390_vm1, %v235_v16 }
 0x170   : > { %2193 = vmatmul.msk.f32.gmra.mxu1 %vm390_vm1, %v283_v17  ;;  %1639 = vst.msk [vmem:[%s2704_s8 + $0x258] sm:$0xff] %vm390_vm1, %v1214_v19  ;;  %v1357_v20 = vpop.f32.mrf.mxu2 }
 0x171   : > { %v1501_v21 = vpop.f32.mrf.mxu3  ;;  %v1358_v22 = vadd.f32 %v3215_v2, %v1357_v20 }
 0x172   : > { %v1502_v23 = vadd.f32 %v3215_v2, %v1501_v21 }
 0x173   : > { %1687 = vst.msk [vmem:[%s2704_s8 + $0x3d8] sm:$0xff] %vm390_vm1, %v1358_v22 }
 0x174   : > { %v1072_v26 = vpop.f32.mrf.mxu0  ;;  %1735 = vst.msk [vmem:[%s2704_s8 + $0x558] sm:$0xff] %vm390_vm1, %v1502_v23 }
 0x175   : > { %v1216_v27 = vpop.f32.mrf.mxu1  ;;  %v1073_v30 = vadd.f32 %v3215_v2, %v1072_v26  ;;  %2242 = vmatmul.msk.f32.gmra.mxu2 %vm390_vm1, %v332_v24 }
 0x176   : > { %v1217_v31 = vadd.f32 %v3215_v2, %v1216_v27  ;;  %2290 = vmatmul.msk.f32.gmra.mxu3 %vm390_vm1, %v380_v25 }
 0x177   : > { %1592 = vst.msk [vmem:[%s2704_s8 + $0xe0] sm:$0xff] %vm390_vm1, %v1073_v30  ;;  %2146 = vmatmul.msk.f32.gmra.mxu0 %vm390_vm1, %v236_v28 }
 0x178   : > { %2194 = vmatmul.msk.f32.gmra.mxu1 %vm390_vm1, %v284_v29  ;;  %1640 = vst.msk [vmem:[%s2704_s8 + $0x260] sm:$0xff] %vm390_vm1, %v1217_v31  ;;  %v1360_v32 = vpop.f32.mrf.mxu2 }
 0x179   : > { %v1504_v33 = vpop.f32.mrf.mxu3  ;;  %v1361_v34 = vadd.f32 %v3215_v2, %v1360_v32 }
 0x17a   : > { %v1505_v35 = vadd.f32 %v3215_v2, %v1504_v33 }
 0x17b   : > { %1688 = vst.msk [vmem:[%s2704_s8 + $0x3e0] sm:$0xff] %vm390_vm1, %v1361_v34 }
 0x17c   : > { %v1075_v38 = vpop.f32.mrf.mxu0  ;;  %1736 = vst.msk [vmem:[%s2704_s8 + $0x560] sm:$0xff] %vm390_vm1, %v1505_v35 }
 0x17d   : > { %v1219_v39 = vpop.f32.mrf.mxu1  ;;  %v1076_v42 = vadd.f32 %v3215_v2, %v1075_v38  ;;  %2243 = vmatmul.msk.f32.gmra.mxu2 %vm390_vm1, %v333_v36 }
 0x17e   : > { %v1220_v43 = vadd.f32 %v3215_v2, %v1219_v39  ;;  %2291 = vmatmul.msk.f32.gmra.mxu3 %vm390_vm1, %v381_v37 }
 0x17f   : > { %1593 = vst.msk [vmem:[%s2704_s8 + $0xe8] sm:$0xff] %vm390_vm1, %v1076_v42  ;;  %2147 = vmatmul.msk.f32.gmra.mxu0 %vm390_vm1, %v237_v40 }
 0x180   : > { %2195 = vmatmul.msk.f32.gmra.mxu1 %vm390_vm1, %v285_v41  ;;  %1641 = vst.msk [vmem:[%s2704_s8 + $0x268] sm:$0xff] %vm390_vm1, %v1220_v43  ;;  %v1363_v44 = vpop.f32.mrf.mxu2 }
 0x181   : > { %v1507_v45 = vpop.f32.mrf.mxu3  ;;  %v1364_v46 = vadd.f32 %v3215_v2, %v1363_v44 }
 0x182   : > { %v1508_v47 = vadd.f32 %v3215_v2, %v1507_v45 }
 0x183   : > { %1689 = vst.msk [vmem:[%s2704_s8 + $0x3e8] sm:$0xff] %vm390_vm1, %v1364_v46 }
 0x184   : > { %v1078_v50 = vpop.f32.mrf.mxu0  ;;  %1737 = vst.msk [vmem:[%s2704_s8 + $0x568] sm:$0xff] %vm390_vm1, %v1508_v47 }
 0x185   : > { %v1222_v51 = vpop.f32.mrf.mxu1  ;;  %v1079_v54 = vadd.f32 %v3215_v2, %v1078_v50  ;;  %2244 = vmatmul.msk.f32.gmra.mxu2 %vm390_vm1, %v334_v48 }
 0x186   : > { %v1223_v55 = vadd.f32 %v3215_v2, %v1222_v51  ;;  %2292 = vmatmul.msk.f32.gmra.mxu3 %vm390_vm1, %v382_v49 }
 0x187   : > { %1594 = vst.msk [vmem:[%s2704_s8 + $0xf0] sm:$0xff] %vm390_vm1, %v1079_v54  ;;  %2148 = vmatmul.msk.f32.gmra.mxu0 %vm390_vm1, %v238_v52 }
 0x188   : > { %2196 = vmatmul.msk.f32.gmra.mxu1 %vm390_vm1, %v286_v53  ;;  %1642 = vst.msk [vmem:[%s2704_s8 + $0x270] sm:$0xff] %vm390_vm1, %v1223_v55  ;;  %v1366_v56 = vpop.f32.mrf.mxu2 }
 0x189   : > { %v1510_v57 = vpop.f32.mrf.mxu3  ;;  %v1367_v58 = vadd.f32 %v3215_v2, %v1366_v56 }
 0x18a   : > { %v1511_v59 = vadd.f32 %v3215_v2, %v1510_v57 }
 0x18b   : > { %1690 = vst.msk [vmem:[%s2704_s8 + $0x3f0] sm:$0xff] %vm390_vm1, %v1367_v58 }
 0x18c   : > { %v1081_v62 = vpop.f32.mrf.mxu0  ;;  %1738 = vst.msk [vmem:[%s2704_s8 + $0x570] sm:$0xff] %vm390_vm1, %v1511_v59 }
 0x18d   : > { %v1225_v63 = vpop.f32.mrf.mxu1  ;;  %v1082_v3 = vadd.f32 %v3215_v2, %v1081_v62  ;;  %2245 = vmatmul.msk.f32.gmra.mxu2 %vm390_vm1, %v335_v60 }
 0x18e   : > { %v1226_v4 = vadd.f32 %v3215_v2, %v1225_v63  ;;  %2293 = vmatmul.msk.f32.gmra.mxu3 %vm390_vm1, %v383_v61 }
 0x18f   : > { %1595 = vst.msk [vmem:[%s2704_s8 + $0xf8] sm:$0xff] %vm390_vm1, %v1082_v3  ;;  %2149 = vmatmul.msk.f32.gmra.mxu0 %vm390_vm1, %v239_v0 }
 0x190   : > { %2197 = vmatmul.msk.f32.gmra.mxu1 %vm390_vm1, %v287_v1  ;;  %1643 = vst.msk [vmem:[%s2704_s8 + $0x278] sm:$0xff] %vm390_vm1, %v1226_v4  ;;  %v1369_v5 = vpop.f32.mrf.mxu2 }
 0x191   : > { %v1513_v6 = vpop.f32.mrf.mxu3  ;;  %v1370_v7 = vadd.f32 %v3215_v2, %v1369_v5 }
 0x192   : > { %v1514_v8 = vadd.f32 %v3215_v2, %v1513_v6 }
 0x193   : > { %1691 = vst.msk [vmem:[%s2704_s8 + $0x3f8] sm:$0xff] %vm390_vm1, %v1370_v7 }
 0x194   : > { %v1084_v9 = vpop.f32.mrf.mxu0  ;;  %1739 = vst.msk [vmem:[%s2704_s8 + $0x578] sm:$0xff] %vm390_vm1, %v1514_v8 }
 0x195   : > { %v1228_v10 = vpop.f32.mrf.mxu1  ;;  %v1085_v11 = vadd.f32 %v3215_v2, %v1084_v9 }
 0x196   : > { %v1229_v12 = vadd.f32 %v3215_v2, %v1228_v10 }
 0x197   : > { %1596 = vst.msk [vmem:[%s2704_s8 + $0x100] sm:$0xff] %vm390_vm1, %v1085_v11 }
 0x198   : > { %1644 = vst.msk [vmem:[%s2704_s8 + $0x280] sm:$0xff] %vm390_vm1, %v1229_v12  ;;  %v1372_v13 = vpop.f32.mrf.mxu2 }
 0x199   : > { %v1516_v14 = vpop.f32.mrf.mxu3  ;;  %v1373_v15 = vadd.f32 %v3215_v2, %v1372_v13 }
 0x19a   : > { %v1517_v16 = vadd.f32 %v3215_v2, %v1516_v14 }
 0x19b   : > { %1692 = vst.msk [vmem:[%s2704_s8 + $0x400] sm:$0xff] %vm390_vm1, %v1373_v15 }
 0x19c   : > { %v1087_v17 = vpop.f32.mrf.mxu0  ;;  %1740 = vst.msk [vmem:[%s2704_s8 + $0x580] sm:$0xff] %vm390_vm1, %v1517_v16 }
 0x19d   : > { %v1231_v18 = vpop.f32.mrf.mxu1  ;;  %v1088_v19 = vadd.f32 %v3215_v2, %v1087_v17 }
 0x19e   : > { %v1232_v20 = vadd.f32 %v3215_v2, %v1231_v18 }
 0x19f   : > { %1597 = vst.msk [vmem:[%s2704_s8 + $0x108] sm:$0xff] %vm390_vm1, %v1088_v19 }
 0x1a0   : > { %1645 = vst.msk [vmem:[%s2704_s8 + $0x288] sm:$0xff] %vm390_vm1, %v1232_v20  ;;  %v1375_v21 = vpop.f32.mrf.mxu2 }
 0x1a1   : > { %v1519_v22 = vpop.f32.mrf.mxu3  ;;  %v1376_v23 = vadd.f32 %v3215_v2, %v1375_v21 }
 0x1a2   : > { %v1520_v24 = vadd.f32 %v3215_v2, %v1519_v22 }
 0x1a3   : > { %1693 = vst.msk [vmem:[%s2704_s8 + $0x408] sm:$0xff] %vm390_vm1, %v1376_v23 }
 0x1a4   : > { %v1090_v25 = vpop.f32.mrf.mxu0  ;;  %1741 = vst.msk [vmem:[%s2704_s8 + $0x588] sm:$0xff] %vm390_vm1, %v1520_v24 }
 0x1a5   : > { %v1234_v26 = vpop.f32.mrf.mxu1  ;;  %v1091_v27 = vadd.f32 %v3215_v2, %v1090_v25 }
 0x1a6   : > { %v1235_v28 = vadd.f32 %v3215_v2, %v1234_v26 }
 0x1a7   : > { %1598 = vst.msk [vmem:[%s2704_s8 + $0x110] sm:$0xff] %vm390_vm1, %v1091_v27 }
 0x1a8   : > { %1646 = vst.msk [vmem:[%s2704_s8 + $0x290] sm:$0xff] %vm390_vm1, %v1235_v28  ;;  %v1378_v29 = vpop.f32.mrf.mxu2 }
 0x1a9   : > { %v1522_v30 = vpop.f32.mrf.mxu3  ;;  %v1379_v31 = vadd.f32 %v3215_v2, %v1378_v29 }
 0x1aa   : > { %v1523_v32 = vadd.f32 %v3215_v2, %v1522_v30 }
 0x1ab   : > { %1694 = vst.msk [vmem:[%s2704_s8 + $0x410] sm:$0xff] %vm390_vm1, %v1379_v31 }
 0x1ac   : > { %v1093_v33 = vpop.f32.mrf.mxu0  ;;  %1742 = vst.msk [vmem:[%s2704_s8 + $0x590] sm:$0xff] %vm390_vm1, %v1523_v32 }
 0x1ad   : > { %v1237_v34 = vpop.f32.mrf.mxu1  ;;  %v1094_v35 = vadd.f32 %v3215_v2, %v1093_v33 }
 0x1ae   : > { %v1238_v36 = vadd.f32 %v3215_v2, %v1237_v34 }
 0x1af   : > { %1599 = vst.msk [vmem:[%s2704_s8 + $0x118] sm:$0xff] %vm390_vm1, %v1094_v35 }
 0x1b0   : > { %1647 = vst.msk [vmem:[%s2704_s8 + $0x298] sm:$0xff] %vm390_vm1, %v1238_v36  ;;  %v1381_v37 = vpop.f32.mrf.mxu2 }
 0x1b1   : > { %v1525_v38 = vpop.f32.mrf.mxu3  ;;  %v1382_v39 = vadd.f32 %v3215_v2, %v1381_v37 }
 0x1b2   : > { %v1526_v40 = vadd.f32 %v3215_v2, %v1525_v38 }
 0x1b3   : > { %1695 = vst.msk [vmem:[%s2704_s8 + $0x418] sm:$0xff] %vm390_vm1, %v1382_v39 }
 0x1b4   : > { %v1096_v41 = vpop.f32.mrf.mxu0  ;;  %1743 = vst.msk [vmem:[%s2704_s8 + $0x598] sm:$0xff] %vm390_vm1, %v1526_v40 }
 0x1b5   : > { %v1240_v42 = vpop.f32.mrf.mxu1  ;;  %v1097_v43 = vadd.f32 %v3215_v2, %v1096_v41 }
 0x1b6   : > { %v1241_v44 = vadd.f32 %v3215_v2, %v1240_v42 }
 0x1b7   : > { %1600 = vst.msk [vmem:[%s2704_s8 + $0x120] sm:$0xff] %vm390_vm1, %v1097_v43 }
 0x1b8   : > { %1648 = vst.msk [vmem:[%s2704_s8 + $0x2a0] sm:$0xff] %vm390_vm1, %v1241_v44  ;;  %v1384_v45 = vpop.f32.mrf.mxu2 }
 0x1b9   : > { %v1528_v46 = vpop.f32.mrf.mxu3  ;;  %v1385_v47 = vadd.f32 %v3215_v2, %v1384_v45 }
 0x1ba   : > { %v1529_v48 = vadd.f32 %v3215_v2, %v1528_v46 }
 0x1bb   : > { %1696 = vst.msk [vmem:[%s2704_s8 + $0x420] sm:$0xff] %vm390_vm1, %v1385_v47 }
 0x1bc   : > { %v1099_v49 = vpop.f32.mrf.mxu0  ;;  %1744 = vst.msk [vmem:[%s2704_s8 + $0x5a0] sm:$0xff] %vm390_vm1, %v1529_v48 }
 0x1bd   : > { %v1243_v50 = vpop.f32.mrf.mxu1  ;;  %v1100_v51 = vadd.f32 %v3215_v2, %v1099_v49 }
 0x1be   : > { %v1244_v52 = vadd.f32 %v3215_v2, %v1243_v50 }
 0x1bf   : > { %1601 = vst.msk [vmem:[%s2704_s8 + $0x128] sm:$0xff] %vm390_vm1, %v1100_v51 }
 0x1c0   : > { %1649 = vst.msk [vmem:[%s2704_s8 + $0x2a8] sm:$0xff] %vm390_vm1, %v1244_v52  ;;  %v1387_v53 = vpop.f32.mrf.mxu2 }
 0x1c1   : > { %v1531_v54 = vpop.f32.mrf.mxu3  ;;  %v1388_v55 = vadd.f32 %v3215_v2, %v1387_v53 }
 0x1c2   : > { %v1532_v56 = vadd.f32 %v3215_v2, %v1531_v54 }
 0x1c3   : > { %1697 = vst.msk [vmem:[%s2704_s8 + $0x428] sm:$0xff] %vm390_vm1, %v1388_v55 }
 0x1c4   : > { %v1102_v57 = vpop.f32.mrf.mxu0  ;;  %1745 = vst.msk [vmem:[%s2704_s8 + $0x5a8] sm:$0xff] %vm390_vm1, %v1532_v56 }
 0x1c5   : > { %v1246_v58 = vpop.f32.mrf.mxu1  ;;  %v1103_v59 = vadd.f32 %v3215_v2, %v1102_v57 }
 0x1c6   : > { %v1247_v60 = vadd.f32 %v3215_v2, %v1246_v58 }
 0x1c7   : > { %1602 = vst.msk [vmem:[%s2704_s8 + $0x130] sm:$0xff] %vm390_vm1, %v1103_v59 }
 0x1c8   : > { %1650 = vst.msk [vmem:[%s2704_s8 + $0x2b0] sm:$0xff] %vm390_vm1, %v1247_v60  ;;  %v1390_v61 = vpop.f32.mrf.mxu2 }
 0x1c9   : > { %v1534_v62 = vpop.f32.mrf.mxu3  ;;  %v1391_v63 = vadd.f32 %v3215_v2, %v1390_v61 }
 0x1ca   : > { %v1535_v0 = vadd.f32 %v3215_v2, %v1534_v62 }
 0x1cb   : > { %1698 = vst.msk [vmem:[%s2704_s8 + $0x430] sm:$0xff] %vm390_vm1, %v1391_v63 }
 0x1cc   : > { %v1105_v1 = vpop.f32.mrf.mxu0  ;;  %1746 = vst.msk [vmem:[%s2704_s8 + $0x5b0] sm:$0xff] %vm390_vm1, %v1535_v0 }
 0x1cd   : > { %v1249_v3 = vpop.f32.mrf.mxu1  ;;  %v1106_v4 = vadd.f32 %v3215_v2, %v1105_v1 }
 0x1ce   : > { %v1250_v5 = vadd.f32 %v3215_v2, %v1249_v3 }
 0x1cf   : > { %1603 = vst.msk [vmem:[%s2704_s8 + $0x138] sm:$0xff] %vm390_vm1, %v1106_v4 }
 0x1d0   : > { %1651 = vst.msk [vmem:[%s2704_s8 + $0x2b8] sm:$0xff] %vm390_vm1, %v1250_v5  ;;  %v1393_v6 = vpop.f32.mrf.mxu2 }
 0x1d1   : > { %v1537_v7 = vpop.f32.mrf.mxu3  ;;  %v1394_v8 = vadd.f32 %v3215_v2, %v1393_v6 }
 0x1d2   : > { %v1538_v9 = vadd.f32 %v3215_v2, %v1537_v7 }
 0x1d3   : > { %1699 = vst.msk [vmem:[%s2704_s8 + $0x438] sm:$0xff] %vm390_vm1, %v1394_v8 }
 0x1d4   : > { %v1108_v10 = vpop.f32.mrf.mxu0  ;;  %1747 = vst.msk [vmem:[%s2704_s8 + $0x5b8] sm:$0xff] %vm390_vm1, %v1538_v9 }
 0x1d5   : > { %v1252_v11 = vpop.f32.mrf.mxu1  ;;  %v1109_v12 = vadd.f32 %v3215_v2, %v1108_v10 }
 0x1d6   : > { %v1253_v13 = vadd.f32 %v3215_v2, %v1252_v11 }
 0x1d7   : > { %1604 = vst.msk [vmem:[%s2704_s8 + $0x140] sm:$0xff] %vm390_vm1, %v1109_v12 }
 0x1d8   : > { %1652 = vst.msk [vmem:[%s2704_s8 + $0x2c0] sm:$0xff] %vm390_vm1, %v1253_v13  ;;  %v1396_v14 = vpop.f32.mrf.mxu2 }
 0x1d9   : > { %v1540_v15 = vpop.f32.mrf.mxu3  ;;  %v1397_v16 = vadd.f32 %v3215_v2, %v1396_v14 }
 0x1da   : > { %v1541_v17 = vadd.f32 %v3215_v2, %v1540_v15 }
 0x1db   : > { %1700 = vst.msk [vmem:[%s2704_s8 + $0x440] sm:$0xff] %vm390_vm1, %v1397_v16 }
 0x1dc   : > { %v1111_v18 = vpop.f32.mrf.mxu0  ;;  %1748 = vst.msk [vmem:[%s2704_s8 + $0x5c0] sm:$0xff] %vm390_vm1, %v1541_v17 }
 0x1dd   : > { %v1255_v19 = vpop.f32.mrf.mxu1  ;;  %v1112_v20 = vadd.f32 %v3215_v2, %v1111_v18 }
 0x1de   : > { %v1256_v21 = vadd.f32 %v3215_v2, %v1255_v19 }
 0x1df   : > { %1605 = vst.msk [vmem:[%s2704_s8 + $0x148] sm:$0xff] %vm390_vm1, %v1112_v20 }
 0x1e0   : > { %1653 = vst.msk [vmem:[%s2704_s8 + $0x2c8] sm:$0xff] %vm390_vm1, %v1256_v21  ;;  %v1399_v22 = vpop.f32.mrf.mxu2 }
 0x1e1   : > { %v1543_v23 = vpop.f32.mrf.mxu3  ;;  %v1400_v24 = vadd.f32 %v3215_v2, %v1399_v22 }
 0x1e2   : > { %v1544_v25 = vadd.f32 %v3215_v2, %v1543_v23 }
 0x1e3   : > { %1701 = vst.msk [vmem:[%s2704_s8 + $0x448] sm:$0xff] %vm390_vm1, %v1400_v24 }
 0x1e4   : > { %v1114_v26 = vpop.f32.mrf.mxu0  ;;  %1749 = vst.msk [vmem:[%s2704_s8 + $0x5c8] sm:$0xff] %vm390_vm1, %v1544_v25 }
 0x1e5   : > { %v1258_v27 = vpop.f32.mrf.mxu1  ;;  %v1115_v28 = vadd.f32 %v3215_v2, %v1114_v26 }
 0x1e6   : > { %v1259_v29 = vadd.f32 %v3215_v2, %v1258_v27 }
 0x1e7   : > { %1606 = vst.msk [vmem:[%s2704_s8 + $0x150] sm:$0xff] %vm390_vm1, %v1115_v28 }
 0x1e8   : > { %1654 = vst.msk [vmem:[%s2704_s8 + $0x2d0] sm:$0xff] %vm390_vm1, %v1259_v29  ;;  %v1402_v30 = vpop.f32.mrf.mxu2 }
 0x1e9   : > { %v1546_v31 = vpop.f32.mrf.mxu3  ;;  %v1403_v32 = vadd.f32 %v3215_v2, %v1402_v30 }
 0x1ea   : > { %v1547_v33 = vadd.f32 %v3215_v2, %v1546_v31 }
 0x1eb   : > { %1702 = vst.msk [vmem:[%s2704_s8 + $0x450] sm:$0xff] %vm390_vm1, %v1403_v32 }
 0x1ec   : > { %v1117_v34 = vpop.f32.mrf.mxu0  ;;  %1750 = vst.msk [vmem:[%s2704_s8 + $0x5d0] sm:$0xff] %vm390_vm1, %v1547_v33 }
 0x1ed   : > { %v1261_v35 = vpop.f32.mrf.mxu1  ;;  %v1118_v36 = vadd.f32 %v3215_v2, %v1117_v34 }
 0x1ee   : > { %v1262_v37 = vadd.f32 %v3215_v2, %v1261_v35 }
 0x1ef   : > { %1607 = vst.msk [vmem:[%s2704_s8 + $0x158] sm:$0xff] %vm390_vm1, %v1118_v36 }
 0x1f0   : > { %1655 = vst.msk [vmem:[%s2704_s8 + $0x2d8] sm:$0xff] %vm390_vm1, %v1262_v37  ;;  %v1405_v38 = vpop.f32.mrf.mxu2 }
 0x1f1   : > { %v1549_v39 = vpop.f32.mrf.mxu3  ;;  %v1406_v40 = vadd.f32 %v3215_v2, %v1405_v38 }
 0x1f2   : > { %v1550_v41 = vadd.f32 %v3215_v2, %v1549_v39 }
 0x1f3   : > { %1703 = vst.msk [vmem:[%s2704_s8 + $0x458] sm:$0xff] %vm390_vm1, %v1406_v40 }
 0x1f4   : > { %v1120_v42 = vpop.f32.mrf.mxu0  ;;  %1751 = vst.msk [vmem:[%s2704_s8 + $0x5d8] sm:$0xff] %vm390_vm1, %v1550_v41 }
 0x1f5   : > { %v1264_v43 = vpop.f32.mrf.mxu1  ;;  %v1121_v44 = vadd.f32 %v3215_v2, %v1120_v42 }
 0x1f6   : > { %v1265_v45 = vadd.f32 %v3215_v2, %v1264_v43 }
 0x1f7   : > { %1608 = vst.msk [vmem:[%s2704_s8 + $0x160] sm:$0xff] %vm390_vm1, %v1121_v44 }
 0x1f8   : > { %1656 = vst.msk [vmem:[%s2704_s8 + $0x2e0] sm:$0xff] %vm390_vm1, %v1265_v45  ;;  %v1408_v46 = vpop.f32.mrf.mxu2 }
 0x1f9   : > { %v1552_v47 = vpop.f32.mrf.mxu3  ;;  %v1409_v48 = vadd.f32 %v3215_v2, %v1408_v46 }
 0x1fa   : > { %v1553_v49 = vadd.f32 %v3215_v2, %v1552_v47 }
 0x1fb   : > { %1704 = vst.msk [vmem:[%s2704_s8 + $0x460] sm:$0xff] %vm390_vm1, %v1409_v48 }
 0x1fc   : > { %v1123_v50 = vpop.f32.mrf.mxu0  ;;  %1752 = vst.msk [vmem:[%s2704_s8 + $0x5e0] sm:$0xff] %vm390_vm1, %v1553_v49 }
 0x1fd   : > { %v1267_v51 = vpop.f32.mrf.mxu1  ;;  %v1124_v52 = vadd.f32 %v3215_v2, %v1123_v50 }
 0x1fe   : > { %v1268_v53 = vadd.f32 %v3215_v2, %v1267_v51 }
 0x1ff   : > { %1609 = vst.msk [vmem:[%s2704_s8 + $0x168] sm:$0xff] %vm390_vm1, %v1124_v52 }
 0x200   : > { %1657 = vst.msk [vmem:[%s2704_s8 + $0x2e8] sm:$0xff] %vm390_vm1, %v1268_v53  ;;  %v1411_v54 = vpop.f32.mrf.mxu2 }
 0x201   : > { %v1555_v55 = vpop.f32.mrf.mxu3  ;;  %v1412_v56 = vadd.f32 %v3215_v2, %v1411_v54 }
 0x202   : > { %v1556_v57 = vadd.f32 %v3215_v2, %v1555_v55 }
 0x203   : > { %1705 = vst.msk [vmem:[%s2704_s8 + $0x468] sm:$0xff] %vm390_vm1, %v1412_v56 }
 0x204   : > { %v1126_v58 = vpop.f32.mrf.mxu0  ;;  %1753 = vst.msk [vmem:[%s2704_s8 + $0x5e8] sm:$0xff] %vm390_vm1, %v1556_v57 }
 0x205   : > { %v1270_v59 = vpop.f32.mrf.mxu1  ;;  %v1127_v60 = vadd.f32 %v3215_v2, %v1126_v58 }
 0x206   : > { %v1271_v61 = vadd.f32 %v3215_v2, %v1270_v59 }
 0x207   : > { %1610 = vst.msk [vmem:[%s2704_s8 + $0x170] sm:$0xff] %vm390_vm1, %v1127_v60 }
 0x208   : > { %1658 = vst.msk [vmem:[%s2704_s8 + $0x2f0] sm:$0xff] %vm390_vm1, %v1271_v61  ;;  %v1414_v62 = vpop.f32.mrf.mxu2 }
 0x209   : > { %v1558_v63 = vpop.f32.mrf.mxu3  ;;  %v1415_v0 = vadd.f32 %v3215_v2, %v1414_v62 }
 0x20a   : > { %v1559_v1 = vadd.f32 %v3215_v2, %v1558_v63 }
 0x20b   : > { %1706 = vst.msk [vmem:[%s2704_s8 + $0x470] sm:$0xff] %vm390_vm1, %v1415_v0 }
 0x20c   : > { %v1129_v3 = vpop.f32.mrf.mxu0  ;;  %1754 = vst.msk [vmem:[%s2704_s8 + $0x5f0] sm:$0xff] %vm390_vm1, %v1559_v1 }
 0x20d   : > { %v1273_v4 = vpop.f32.mrf.mxu1  ;;  %v1130_v5 = vadd.f32 %v3215_v2, %v1129_v3 }
 0x20e   : > { %v1274_v6 = vadd.f32 %v3215_v2, %v1273_v4 }
 0x20f   : > { %1611 = vst.msk [vmem:[%s2704_s8 + $0x178] sm:$0xff] %vm390_vm1, %v1130_v5 }
 0x210   : > { %1659 = vst.msk [vmem:[%s2704_s8 + $0x2f8] sm:$0xff] %vm390_vm1, %v1274_v6  ;;  %v1417_v7 = vpop.f32.mrf.mxu2  ;;  %1762 = sbr.rel (!%p2542_p4) target bundleno = 597 (0x255), region = 36 }
 0x211   : > { %v1561_v8 = vpop.f32.mrf.mxu3  ;;  %v1418_v9 = vadd.f32 %v3215_v2, %v1417_v7 }
 0x212   : > { %v1562_v10 = vadd.f32 %v3215_v2, %v1561_v8 }
 0x213   : > { %1707 = vst.msk [vmem:[%s2704_s8 + $0x478] sm:$0xff] %vm390_vm1, %v1418_v9 }
 0x214   : > { %1755 = vst.msk [vmem:[%s2704_s8 + $0x5f8] sm:$0xff] %vm390_vm1, %v1562_v10 }
 0x215   : > { %s3691_s11 = smov (!%p1765_p8, %s1764_s11), 192 }
 0x216   : > { %s2294_s21 = sshll.u32 %s3691_s11, 3 }
 0x217   : > { %p2297_p9 = scmp.eq.s32.totalorder %s2294_s21, 0 }
 0x218   : > { %s3548_s22 = sshrl.u32 (!%p2297_p9), %s3691_s11, 5 }
 0x219   : > { %1773 = sbr.rel (%p2297_p9) target bundleno = 597 (0x255), region = 40  ;;  %p2298_p10 = scmp.le.s32.totalorder (!%p2297_p9), %s3548_s22, 0 }
 0x21e   : > { %2052 = sbr.rel (%p2298_p10) target bundleno = 580 (0x244), region = 116  ;;  %s3682_s15 = smov (!%p2298_p10), %s3542_s18 }
 0x21f   : > { %s3683_s20 = smov (!%p2298_p10), %s2704_s8  ;;  %s3557_s23 = smov (!%p2298_p10), 0  }
 0x220   : > { %s3559_s24 = smov (!%p2298_p10), 0  }
 0x223 LB: >> { %v1898_v2 = vld [vmem:[%s2471_s20] sm:$0xff]  ;;  %v1900_v11 = vld [vmem:[%s2471_s20 + $0x8] sm:$0xff]  ;;  %v1902_v12 = vld [vmem:[%s2471_s20 + $0x10] sm:$0xff]  ;;  %s1962_s25 = sadd.s32 1, %s2475_s23  ;;  %s1892_s24 = sadd.s32 1, %s2479_s24   ;;  %s2479_s24 = sphi %s3559_s24, %s1892_s24   ;;  %s2475_s23 = sphi %s3557_s23, %s3686_s23   ;;  %s2471_s20 = sphi %s3683_s20, %s3685_s20   ;;  %s2467_s15 = sphi %s3682_s15, %s3684_s15  }
 0x224   : >> { %1899 = vst [vmem:[%s2467_s15] sm:$0xff] %v1898_v2  ;;  %v1904_v13 = vld [vmem:[%s2471_s20 + $0x18] sm:$0xff]  ;;  %p1963_p11 = scmp.ge.s32.totalorder %s1962_s25, %s3548_s22  ;;  %v1906_v14 = vld [vmem:[%s2471_s20 + $0x20] sm:$0xff]  ;;  %v1908_v15 = vld [vmem:[%s2471_s20 + $0x28] sm:$0xff]  ;;  %p1891_p12 = scmp.ge.s32.totalorder %s1892_s24, %s3548_s22 }
 0x225   : >> { %1901 = vst [vmem:[%s2467_s15 + $0x8] sm:$0xff] %v1900_v11  ;;  %v1910_v16 = vld [vmem:[%s2471_s20 + $0x30] sm:$0xff]  ;;  %v1912_v17 = vld [vmem:[%s2471_s20 + $0x38] sm:$0xff]  ;;  %v1914_v18 = vld [vmem:[%s2471_s20 + $0x40] sm:$0xff] }
 0x226   : >> { %1903 = vst [vmem:[%s2467_s15 + $0x10] sm:$0xff] %v1902_v12  ;;  %s3693_s25 = smov (%p1963_p11, %s1962_s25), 0  ;;  %v1916_v19 = vld [vmem:[%s2471_s20 + $0x48] sm:$0xff]  ;;  %v1918_v20 = vld [vmem:[%s2471_s20 + $0x50] sm:$0xff]  ;;  %v1920_v21 = vld [vmem:[%s2471_s20 + $0x58] sm:$0xff] }
 0x227   : >> { %1905 = vst [vmem:[%s2467_s15 + $0x18] sm:$0xff] %v1904_v13  ;;  %s2299_s26 = sshll.u32 %s3693_s25, 8  ;;  %v1922_v22 = vld [vmem:[%s2471_s20 + $0x60] sm:$0xff]  ;;  %v1924_v23 = vld [vmem:[%s2471_s20 + $0x68] sm:$0xff]  ;;  %v1926_v24 = vld [vmem:[%s2471_s20 + $0x70] sm:$0xff]  ;;  %s3686_s23 = smov %s3693_s25 }
 0x228   : >> { %1907 = vst [vmem:[%s2467_s15 + $0x20] sm:$0xff] %v1906_v14  ;;  %s3591_s27 = scalar_lea.vmem %s2704_s8, %s2299_s26 [#allocation2]   ;;  %s3594_s28 = scalar_lea.vmem %s3542_s18, %s2299_s26   ;;  %v1928_v25 = vld [vmem:[%s2471_s20 + $0x78] sm:$0xff]  ;;  %v1930_v26 = vld [vmem:[%s2471_s20 + $0x80] sm:$0xff]  ;;  %v1932_v27 = vld [vmem:[%s2471_s20 + $0x88] sm:$0xff] }
 0x229   : >> { %1909 = vst [vmem:[%s2467_s15 + $0x28] sm:$0xff] %v1908_v15  ;;  %v1934_v28 = vld [vmem:[%s2471_s20 + $0x90] sm:$0xff]  ;;  %v1936_v29 = vld [vmem:[%s2471_s20 + $0x98] sm:$0xff]  ;;  %v1938_v30 = vld [vmem:[%s2471_s20 + $0xa0] sm:$0xff] }
 0x22a   : >> { %1911 = vst [vmem:[%s2467_s15 + $0x30] sm:$0xff] %v1910_v16  ;;  %v1940_v31 = vld [vmem:[%s2471_s20 + $0xa8] sm:$0xff]  ;;  %v1942_v32 = vld [vmem:[%s2471_s20 + $0xb0] sm:$0xff]  ;;  %v1944_v33 = vld [vmem:[%s2471_s20 + $0xb8] sm:$0xff] }
 0x22b   : >> { %1913 = vst [vmem:[%s2467_s15 + $0x38] sm:$0xff] %v1912_v17  ;;  %v1946_v34 = vld [vmem:[%s2471_s20 + $0xc0] sm:$0xff]  ;;  %v1948_v35 = vld [vmem:[%s2471_s20 + $0xc8] sm:$0xff]  ;;  %v1950_v36 = vld [vmem:[%s2471_s20 + $0xd0] sm:$0xff] }
 0x22c   : >> { %1915 = vst [vmem:[%s2467_s15 + $0x40] sm:$0xff] %v1914_v18  ;;  %v1952_v37 = vld [vmem:[%s2471_s20 + $0xd8] sm:$0xff]  ;;  %v1954_v38 = vld [vmem:[%s2471_s20 + $0xe0] sm:$0xff]  ;;  %v1956_v39 = vld [vmem:[%s2471_s20 + $0xe8] sm:$0xff] }
 0x22d   : >> { %1917 = vst [vmem:[%s2467_s15 + $0x48] sm:$0xff] %v1916_v19  ;;  %v1958_v40 = vld [vmem:[%s2471_s20 + $0xf0] sm:$0xff]  ;;  %v1960_v41 = vld [vmem:[%s2471_s20 + $0xf8] sm:$0xff]  ;;  %s3685_s20 = smov %s3591_s27 }
 0x22e   : >> { %1919 = vst [vmem:[%s2467_s15 + $0x50] sm:$0xff] %v1918_v20 }
 0x22f   : >> { %1921 = vst [vmem:[%s2467_s15 + $0x58] sm:$0xff] %v1920_v21 }
 0x230   : >> { %1923 = vst [vmem:[%s2467_s15 + $0x60] sm:$0xff] %v1922_v22 }
 0x231   : >> { %1925 = vst [vmem:[%s2467_s15 + $0x68] sm:$0xff] %v1924_v23 }
 0x232   : >> { %1927 = vst [vmem:[%s2467_s15 + $0x70] sm:$0xff] %v1926_v24 }
 0x233   : >> { %1929 = vst [vmem:[%s2467_s15 + $0x78] sm:$0xff] %v1928_v25 }
 0x234   : >> { %1931 = vst [vmem:[%s2467_s15 + $0x80] sm:$0xff] %v1930_v26 }
 0x235   : >> { %1933 = vst [vmem:[%s2467_s15 + $0x88] sm:$0xff] %v1932_v27 }
 0x236   : >> { %1935 = vst [vmem:[%s2467_s15 + $0x90] sm:$0xff] %v1934_v28 }
 0x237   : >> { %1937 = vst [vmem:[%s2467_s15 + $0x98] sm:$0xff] %v1936_v29 }
 0x238   : >> { %1939 = vst [vmem:[%s2467_s15 + $0xa0] sm:$0xff] %v1938_v30 }
 0x239   : >> { %1941 = vst [vmem:[%s2467_s15 + $0xa8] sm:$0xff] %v1940_v31 }
 0x23a   : >> { %1943 = vst [vmem:[%s2467_s15 + $0xb0] sm:$0xff] %v1942_v32 }
 0x23b   : >> { %1945 = vst [vmem:[%s2467_s15 + $0xb8] sm:$0xff] %v1944_v33 }
 0x23c   : >> { %1947 = vst [vmem:[%s2467_s15 + $0xc0] sm:$0xff] %v1946_v34 }
 0x23d   : >> { %1949 = vst [vmem:[%s2467_s15 + $0xc8] sm:$0xff] %v1948_v35 }
 0x23e   : >> { %1951 = vst [vmem:[%s2467_s15 + $0xd0] sm:$0xff] %v1950_v36 }
 0x23f   : >> { %1953 = vst [vmem:[%s2467_s15 + $0xd8] sm:$0xff] %v1952_v37  ;;  %1894 = sbr.rel (!%p1891_p12) target bundleno = 547 (0x223), region = 122 }
 0x240   : >> { %1955 = vst [vmem:[%s2467_s15 + $0xe0] sm:$0xff] %v1954_v38 }
 0x241   : >> { %1957 = vst [vmem:[%s2467_s15 + $0xe8] sm:$0xff] %v1956_v39 }
 0x242   : >> { %1959 = vst [vmem:[%s2467_s15 + $0xf0] sm:$0xff] %v1958_v40 }
 0x243   : >> { %1961 = vst [vmem:[%s2467_s15 + $0xf8] sm:$0xff] %v1960_v41  ;;  %s3684_s15 = smov %s3594_s28 }
 0x244 PF: > { %s3659_s29 = sand.u32 31, %s3691_s11   ;;  %s2310_s30 = sshll.u32 %s3548_s22, 8 }
 0x245   : > { %s1973_s4 = scalar_lea.vmem %s2704_s8, %s2310_s30 [#allocation2]   ;;  %s1975_s5 = scalar_lea.vmem %s3542_s18, %s2310_s30  }
 0x246   : > { %p2304_p13 = scmp.le.s32.totalorder %s3659_s29, 0 }
 0x247   : > { %s2481_s6 = smov (!%p2304_p13), %s1975_s5   ;;  %s2485_s7 = smov (!%p2304_p13), %s1973_s4  }
 0x248   : > { %2066 = sbr.rel (%p2304_p13) target bundleno = 597 (0x255), region = 127  ;;  %s2489_s9 = smov (!%p2304_p13), 0  }
 0x249   : > { %s2493_s10 = smov (!%p2304_p13), 0  }
 0x24d LB: >> { %v1985_v42 = vld [vmem:[%s2487_s7] sm:$0xff]  ;;  %s1987_s11 = sadd.s32 1, %s2491_s9  ;;  %s1979_s10 = sadd.s32 1, %s2495_s10   ;;  %s2495_s10 = sphi %s2493_s10, %s1979_s10   ;;  %s2491_s9 = sphi %s2489_s9, %s2490_s9   ;;  %s2487_s7 = sphi %s2485_s7, %s1992_s7   ;;  %s2483_s6 = sphi %s2481_s6, %s1993_s6  }
 0x24e   : >> { %1986 = vst [vmem:[%s2483_s6] sm:$0xff] %v1985_v42  ;;  %p1988_p0 = scmp.ge.s32.totalorder %s1987_s11, %s3659_s29  ;;  %p1978_p1 = scmp.ge.s32.totalorder %s1979_s10, %s3659_s29 }
 0x250   : >> { %s3695_s11 = smov (%p1988_p0, %s1987_s11), 0  ;;  %1981 = sbr.rel (!%p1978_p1) target bundleno = 589 (0x24d), region = 133 }
 0x251   : >> { %s2305_s8 = sshll.u32 %s3695_s11, 3  ;;  %s2490_s9 = smov %s3695_s11  }
 0x252   : >> { %s1992_s7 = scalar_lea.vmem %s1973_s4, %s2305_s8 [#allocation2]   ;;  %s1993_s6 = scalar_lea.vmem %s1975_s5, %s2305_s8  }
 0x255 PF: > { %p10_p2 = scmp.ge.s32.totalorder %s2532_s16, 9   ;;  %s3687_s12 = smov %s2459_s13 }
 0x256   : > { %s3688_s13 = smov %s2540_s19  ;;  %s3689_s14 = smov %s2532_s16 }
 0x257   :  { %12 = sbr.rel (!%p10_p2) target bundleno = 2 (0x2), region = 144 }

</bundles_post_ra>
